<compile_context>
chip_gen: v5e
topology: v5e:2x2
jax: 0.10.0
libtpu: 0.0.40
codegen_flags: <defaults>
</compile_context>

<pallas_src>
import functools

import jax
import jax.numpy as jnp
from jax import lax
from jax.experimental import pallas as pl
from jax.experimental.pallas import tpu as pltpu

_LANES = 128  # lane width of the per-instance output rows (unmasked vst)


def _hinge_loss_kernel(lab_col_ref, lab_row_ref, feat_ref, out_ref, *, margin):
    gb, b, _ = feat_ref.shape          # block: (GB, B, D)
    inv_bb = 1.0 / float(b * b)

    # Hoisted once per grid step; reused by every instance in the slab.
    row = lax.broadcasted_iota(jnp.int32, (b, b), 0)
    col = lax.broadcasted_iota(jnp.int32, (b, b), 1)
    eye = row == col
    upper = col > row                  # strict upper triangle (diagonal=1)

    for r in range(gb):                # GB is small & static -> unrolled; instances independent
        f = feat_ref[r].astype(jnp.float32)                    # (B, D)

        # Same-class indicator in {+1,-1}: replaces oh @ oh^T and L_S[L_S==0] = -1.
        same = lab_col_ref[r] == lab_row_ref[r]                # (B,1) == (1,B) -> (B,B)
        l_s = jnp.where(same, 1.0, -1.0)

        # Single MXU pass per instance; HIGHEST because the d2 identity cancels.
        gram = lax.dot_general(f, f, (((1,), (1,)), ((), ())),
                               preferred_element_type=jnp.float32,
                               precision=lax.Precision.HIGHEST)  # (B,B): f_i . f_j

        # ||f_i||^2 / ||f_j||^2 straight off the Gram diagonal (no ones-matmul, no transpose).
        diag = jnp.where(eye, gram, 0.0)
        sq_i = jnp.sum(diag, axis=1, keepdims=True)            # (B, 1)
        sq_j = jnp.sum(diag, axis=0, keepdims=True)            # (1, B)
        d2 = jnp.maximum(sq_i + sq_j - 2.0 * gram, 0.0)        # clamp cancellation

        # Hinge: 0.05 - L_S * (margin - d2); strict upper triangle fused with the ReLU.
        dist = 0.05 - l_s * (margin - d2)
        hinge = jnp.where(upper, jnp.maximum(dist, 0.0), 0.0)

        # torch.mean over the full B x B matrix; splat across 128 lanes -> lane-dense store.
        loss_r = jnp.sum(hinge) * inv_bb
        out_ref[r, :] = jnp.broadcast_to(loss_r, (_LANES,))


def hinge_loss_batched(one_hot_codes, features, margin=0.44, instances_per_step=8):
    """one_hot_codes: (G, B, C), features: (G, B, D) -> (G,) f32 per-instance hinge losses."""
    if one_hot_codes.ndim != 3 or features.ndim != 3:
        raise ValueError("expected (G, B, C) one-hot codes and (G, B, D) features")
    g, b, _ = one_hot_codes.shape
    _, _, d = features.shape
    gb = int(instances_per_step)
    assert gb % 8 == 0, "instances_per_step must be a multiple of 8 (sublane tile)"

    # Integer labels from strictly one-hot rows (see semantics note at top of file).
    labels = jnp.argmax(one_hot_codes, axis=-1).astype(jnp.int32)    # (G, B)

    # Pad the instance axis to a whole number of per-step slabs; padded rows produce
    # finite values that are sliced away below.
    g_pad = ((g + gb - 1) // gb) * gb
    feats = features                      # keep caller dtype (bf16 OK); kernel upcasts
    if g_pad != g:
        labels = jnp.concatenate([labels, jnp.zeros((g_pad - g, b), jnp.int32)], axis=0)
        feats = jnp.concatenate([feats, jnp.zeros((g_pad - g, b, d), feats.dtype)], axis=0)

    lab_col = labels[:, :, None]          # (G, B, 1)
    lab_row = labels[:, None, :]          # (G, 1, B) -- "transpose" done for free here

    kernel = functools.partial(_hinge_loss_kernel, margin=float(margin))

    out = pl.pallas_call(
        kernel,
        out_shape=jax.ShapeDtypeStruct((g_pad, _LANES), jnp.float32),
        grid_spec=pltpu.PrefetchScalarGridSpec(
            num_scalar_prefetch=0,
            grid=(g_pad // gb,),
            in_specs=[
                pl.BlockSpec((gb, b, 1), lambda i: (i, 0, 0)),   # labels (column view)
                pl.BlockSpec((gb, 1, b), lambda i: (i, 0, 0)),   # labels (row view)
                pl.BlockSpec((gb, b, d), lambda i: (i, 0, 0)),   # features
            ],
            out_specs=pl.BlockSpec((gb, _LANES), lambda i: (i, 0)),
        ),
        compiler_params=pltpu.CompilerParams(
            dimension_semantics=("parallel",)),   # v7x: shard instances across both TCs
    )(lab_col, lab_row, feats)

    return out[:g, 0]


def hinge_loss(one_hot_codes, features, margin=0.44):
    """Single loss instance, same semantics as the PyTorch module: -> scalar f32."""
    return hinge_loss_batched(one_hot_codes[None], features[None], margin)[0]


if __name__ == "__main__":
    key = jax.random.PRNGKey(0)
    B, C, D = 8, 4, 32     # batch, num classes, feature dim (per loss instance)
    G = 64                 # number of loss instances for the batched path

    def reference(oh, f, margin=0.44):
        # Pure-JAX transliteration of the PyTorch module.
        l_s = oh @ oh.T
        d2 = jnp.sum((f[:, None, :] - f[None, :, :]) ** 2, axis=-1)
        dist = margin - d2
        l_s = jnp.where(l_s == 0.0, -1.0, l_s)
        dist = 0.05 - l_s * dist
        tri = jnp.triu(dist, k=1)
        return jnp.mean(jnp.maximum(tri, 0.0))

    k1, k2, k3 = jax.random.split(key, 3)

    # --- single instance (module semantics) ---
    labels1 = jnp.arange(B, dtype=jnp.int32) % C          # 0,1,2,3,0,1,2,3
    oh1 = jax.nn.one_hot(labels1, C, dtype=jnp.float32)
    f1 = jax.random.normal(k1, (B, D), dtype=jnp.float32)

    loss1 = jax.block_until_ready(hinge_loss(oh1, f1, margin=0.44))
    ref1 = reference(oh1, f1, 0.44)
    assert jnp.allclose(loss1, ref1, rtol=1e-4, atol=1e-4), (loss1, ref1)

    # --- batched instances over the parallel grid (pipelined DMAs, lane-dense output) ---
    labs = jax.random.randint(k2, (G, B), 0, C)
    ohg = jax.nn.one_hot(labs, C, dtype=jnp.float32)
    fg = jax.random.normal(k3, (G, B, D), dtype=jnp.float32)

    losses = jax.block_until_ready(hinge_loss_batched(ohg, fg, margin=0.44))
    refs = jax.vmap(reference, in_axes=(0, 0, None))(ohg, fg, 0.44)
    assert losses.shape == (G,)
    assert jnp.allclose(losses, refs, rtol=1e-4, atol=1e-4), (losses, refs)

    print("KERNEL_OK")
</pallas_src>

<mosaic_0001>
module attributes {stable_mosaic.version = 11 : i64} {
  func.func @_hinge_loss_kernel(%arg0: i32, %arg1: memref<8x8x1xi32, #tpu.memory_space<vmem>>, %arg2: memref<8x1x8xi32, #tpu.memory_space<vmem>>, %arg3: memref<8x8x32xf32, #tpu.memory_space<vmem>>, %arg4: memref<8x128xf32, #tpu.memory_space<vmem>>) attributes {dimension_semantics = [#tpu.dimension_semantics<parallel>], iteration_bounds = array<i64: 1>, scalar_prefetch = 0 : i64, scratch_operands = 0 : i64, tpu.core_type = #tpu.core_type<tc>, window_params = [{transform_indices = @transform_0, window_bounds = array<i64: 8, 8, 1>}, {transform_indices = @transform_1, window_bounds = array<i64: 8, 1, 8>}, {transform_indices = @transform_2, window_bounds = array<i64: 8, 8, 32>}, {transform_indices = @transform_3, window_bounds = array<i64: 8, 128>}]} {
    %0 = tpu.iota {dimensions = array<i32: 0>} : vector<8x8xi32>
    %1 = tpu.iota {dimensions = array<i32: 1>} : vector<8x8xi32>
    %2 = arith.cmpi eq, %0, %1 : vector<8x8xi32>
    %3 = arith.cmpi sgt, %1, %0 : vector<8x8xi32>
    %c0 = arith.constant 0 : index
    %c0_0 = arith.constant 0 : index
    %c0_1 = arith.constant 0 : index
    %4 = vector.load %arg3[%c0, %c0_0, %c0_1] : memref<8x8x32xf32, #tpu.memory_space<vmem>>, vector<1x8x32xf32>
    %5 = vector.shape_cast %4 : vector<1x8x32xf32> to vector<8x32xf32>
    %c0_2 = arith.constant 0 : index
    %c0_3 = arith.constant 0 : index
    %c0_4 = arith.constant 0 : index
    %6 = vector.load %arg1[%c0_2, %c0_3, %c0_4] : memref<8x8x1xi32, #tpu.memory_space<vmem>>, vector<1x8x1xi32>
    %7 = vector.shape_cast %6 : vector<1x8x1xi32> to vector<8x1xi32>
    %c0_5 = arith.constant 0 : index
    %c0_6 = arith.constant 0 : index
    %c0_7 = arith.constant 0 : index
    %8 = vector.load %arg2[%c0_5, %c0_6, %c0_7] : memref<8x1x8xi32, #tpu.memory_space<vmem>>, vector<1x1x8xi32>
    %9 = vector.shape_cast %8 : vector<1x1x8xi32> to vector<1x8xi32>
    %10 = vector.broadcast %7 : vector<8x1xi32> to vector<8x8xi32>
    %11 = vector.broadcast %9 : vector<1x8xi32> to vector<8x8xi32>
    %12 = arith.cmpi eq, %10, %11 : vector<8x8xi32>
    %cst = arith.constant 1.000000e+00 : f32
    %cst_8 = arith.constant -1.000000e+00 : f32
    %13 = vector.broadcast %cst : f32 to vector<8x8xf32>
    %14 = vector.broadcast %cst_8 : f32 to vector<8x8xf32>
    %15 = arith.select %12, %13, %14 : vector<8x8xi1>, vector<8x8xf32>
    %cst_9 = arith.constant dense<0.000000e+00> : vector<8x8xf32>
    %16 = tpu.matmul %5, %5, %cst_9 {dimension_numbers = #tpu.dot_dimension_numbers<[1], [1], [0], [0], [0, 0, 1, 0], [], []>, precision = #tpu.contract_precision<fp32>} : vector<8x32xf32>, vector<8x32xf32>, vector<8x8xf32> -> vector<8x8xf32>
    %cst_10 = arith.constant 0.000000e+00 : f32
    %17 = vector.broadcast %cst_10 : f32 to vector<8x8xf32>
    %18 = arith.select %2, %16, %17 : vector<8x8xi1>, vector<8x8xf32>
    %cst_11 = arith.constant dense<0.000000e+00> : vector<8xf32>
    %19 = vector.multi_reduction <add>, %18, %cst_11 [1] : vector<8x8xf32> to vector<8xf32>
    %20 = vector.shape_cast %19 : vector<8xf32> to vector<8x1xf32>
    %cst_12 = arith.constant dense<0.000000e+00> : vector<8xf32>
    %21 = vector.multi_reduction <add>, %18, %cst_12 [0] : vector<8x8xf32> to vector<8xf32>
    %22 = vector.shape_cast %21 : vector<8xf32> to vector<1x8xf32>
    %23 = vector.broadcast %20 : vector<8x1xf32> to vector<8x8xf32>
    %24 = vector.broadcast %22 : vector<1x8xf32> to vector<8x8xf32>
    %25 = arith.addf %23, %24 : vector<8x8xf32>
    %cst_13 = arith.constant 2.000000e+00 : f32
    %26 = vector.broadcast %cst_13 : f32 to vector<8x8xf32>
    %27 = arith.mulf %26, %16 : vector<8x8xf32>
    %28 = arith.subf %25, %27 : vector<8x8xf32>
    %cst_14 = arith.constant 0.000000e+00 : f32
    %29 = vector.broadcast %cst_14 : f32 to vector<8x8xf32>
    %30 = arith.maximumf %28, %29 : vector<8x8xf32>
    %cst_15 = arith.constant 4.400000e-01 : f32
    %31 = vector.broadcast %cst_15 : f32 to vector<8x8xf32>
    %32 = arith.subf %31, %30 : vector<8x8xf32>
    %33 = arith.mulf %15, %32 : vector<8x8xf32>
    %cst_16 = arith.constant 5.000000e-02 : f32
    %34 = vector.broadcast %cst_16 : f32 to vector<8x8xf32>
    %35 = arith.subf %34, %33 : vector<8x8xf32>
    %cst_17 = arith.constant 0.000000e+00 : f32
    %36 = vector.broadcast %cst_17 : f32 to vector<8x8xf32>
    %37 = arith.maximumf %35, %36 : vector<8x8xf32>
    %cst_18 = arith.constant 0.000000e+00 : f32
    %38 = vector.broadcast %cst_18 : f32 to vector<8x8xf32>
    %39 = arith.select %3, %37, %38 : vector<8x8xi1>, vector<8x8xf32>
    %40 = vector.shape_cast %39 : vector<8x8xf32> to vector<1x8x8xf32>
    %cst_19 = arith.constant dense<0.000000e+00> : vector<1xf32>
    %41 = vector.multi_reduction <add>, %40, %cst_19 [1, 2] : vector<1x8x8xf32> to vector<1xf32>
    %42 = vector.shape_cast %41 : vector<1xf32> to vector<1x1x1xf32>
    %43 = vector.extract %42[0, 0, 0] : f32 from vector<1x1x1xf32>
    %cst_20 = arith.constant 1.562500e-02 : f32
    %44 = arith.mulf %43, %cst_20 : f32
    %45 = vector.broadcast %44 : f32 to vector<128xf32>
    %c0_21 = arith.constant 0 : index
    %c0_22 = arith.constant 0 : index
    %46 = vector.load %arg4[%c0_21, %c0_22] : memref<8x128xf32, #tpu.memory_space<vmem>>, vector<1x128xf32>
    %47 = vector.shape_cast %46 : vector<1x128xf32> to vector<128xf32>
    %48 = vector.shape_cast %45 : vector<128xf32> to vector<1x128xf32>
    tpu.vector_store %arg4[%c0_21, %c0_22], %48 {strides = array<i32>} : memref<8x128xf32, #tpu.memory_space<vmem>>, vector<1x128xf32>,
    %c1 = arith.constant 1 : index
    %c0_23 = arith.constant 0 : index
    %c0_24 = arith.constant 0 : index
    %49 = vector.load %arg3[%c1, %c0_23, %c0_24] : memref<8x8x32xf32, #tpu.memory_space<vmem>>, vector<1x8x32xf32>
    %50 = vector.shape_cast %49 : vector<1x8x32xf32> to vector<8x32xf32>
    %c1_25 = arith.constant 1 : index
    %c0_26 = arith.constant 0 : index
    %c0_27 = arith.constant 0 : index
    %51 = vector.load %arg1[%c1_25, %c0_26, %c0_27] : memref<8x8x1xi32, #tpu.memory_space<vmem>>, vector<1x8x1xi32>
    %52 = vector.shape_cast %51 : vector<1x8x1xi32> to vector<8x1xi32>
    %c1_28 = arith.constant 1 : index
    %c0_29 = arith.constant 0 : index
    %c0_30 = arith.constant 0 : index
    %53 = vector.load %arg2[%c1_28, %c0_29, %c0_30] : memref<8x1x8xi32, #tpu.memory_space<vmem>>, vector<1x1x8xi32>
    %54 = vector.shape_cast %53 : vector<1x1x8xi32> to vector<1x8xi32>
    %55 = vector.broadcast %52 : vector<8x1xi32> to vector<8x8xi32>
    %56 = vector.broadcast %54 : vector<1x8xi32> to vector<8x8xi32>
    %57 = arith.cmpi eq, %55, %56 : vector<8x8xi32>
    %cst_31 = arith.constant 1.000000e+00 : f32
    %cst_32 = arith.constant -1.000000e+00 : f32
    %58 = vector.broadcast %cst_31 : f32 to vector<8x8xf32>
    %59 = vector.broadcast %cst_32 : f32 to vector<8x8xf32>
    %60 = arith.select %57, %58, %59 : vector<8x8xi1>, vector<8x8xf32>
    %cst_33 = arith.constant dense<0.000000e+00> : vector<8x8xf32>
    %61 = tpu.matmul %50, %50, %cst_33 {dimension_numbers = #tpu.dot_dimension_numbers<[1], [1], [0], [0], [0, 0, 1, 0], [], []>, precision = #tpu.contract_precision<fp32>} : vector<8x32xf32>, vector<8x32xf32>, vector<8x8xf32> -> vector<8x8xf32>
    %cst_34 = arith.constant 0.000000e+00 : f32
    %62 = vector.broadcast %cst_34 : f32 to vector<8x8xf32>
    %63 = arith.select %2, %61, %62 : vector<8x8xi1>, vector<8x8xf32>
    %cst_35 = arith.constant dense<0.000000e+00> : vector<8xf32>
    %64 = vector.multi_reduction <add>, %63, %cst_35 [1] : vector<8x8xf32> to vector<8xf32>
    %65 = vector.shape_cast %64 : vector<8xf32> to vector<8x1xf32>
    %cst_36 = arith.constant dense<0.000000e+00> : vector<8xf32>
    %66 = vector.multi_reduction <add>, %63, %cst_36 [0] : vector<8x8xf32> to vector<8xf32>
    %67 = vector.shape_cast %66 : vector<8xf32> to vector<1x8xf32>
    %68 = vector.broadcast %65 : vector<8x1xf32> to vector<8x8xf32>
    %69 = vector.broadcast %67 : vector<1x8xf32> to vector<8x8xf32>
    %70 = arith.addf %68, %69 : vector<8x8xf32>
    %cst_37 = arith.constant 2.000000e+00 : f32
    %71 = vector.broadcast %cst_37 : f32 to vector<8x8xf32>
    %72 = arith.mulf %71, %61 : vector<8x8xf32>
    %73 = arith.subf %70, %72 : vector<8x8xf32>
    %cst_38 = arith.constant 0.000000e+00 : f32
    %74 = vector.broadcast %cst_38 : f32 to vector<8x8xf32>
    %75 = arith.maximumf %73, %74 : vector<8x8xf32>
    %cst_39 = arith.constant 4.400000e-01 : f32
    %76 = vector.broadcast %cst_39 : f32 to vector<8x8xf32>
    %77 = arith.subf %76, %75 : vector<8x8xf32>
    %78 = arith.mulf %60, %77 : vector<8x8xf32>
    %cst_40 = arith.constant 5.000000e-02 : f32
    %79 = vector.broadcast %cst_40 : f32 to vector<8x8xf32>
    %80 = arith.subf %79, %78 : vector<8x8xf32>
    %cst_41 = arith.constant 0.000000e+00 : f32
    %81 = vector.broadcast %cst_41 : f32 to vector<8x8xf32>
    %82 = arith.maximumf %80, %81 : vector<8x8xf32>
    %cst_42 = arith.constant 0.000000e+00 : f32
    %83 = vector.broadcast %cst_42 : f32 to vector<8x8xf32>
    %84 = arith.select %3, %82, %83 : vector<8x8xi1>, vector<8x8xf32>
    %85 = vector.shape_cast %84 : vector<8x8xf32> to vector<1x8x8xf32>
    %cst_43 = arith.constant dense<0.000000e+00> : vector<1xf32>
    %86 = vector.multi_reduction <add>, %85, %cst_43 [1, 2] : vector<1x8x8xf32> to vector<1xf32>
    %87 = vector.shape_cast %86 : vector<1xf32> to vector<1x1x1xf32>
    %88 = vector.extract %87[0, 0, 0] : f32 from vector<1x1x1xf32>
    %cst_44 = arith.constant 1.562500e-02 : f32
    %89 = arith.mulf %88, %cst_44 : f32
    %90 = vector.broadcast %89 : f32 to vector<128xf32>
    %c1_45 = arith.constant 1 : index
    %c0_46 = arith.constant 0 : index
    %91 = vector.load %arg4[%c1_45, %c0_46] : memref<8x128xf32, #tpu.memory_space<vmem>>, vector<1x128xf32>
    %92 = vector.shape_cast %91 : vector<1x128xf32> to vector<128xf32>
    %93 = vector.shape_cast %90 : vector<128xf32> to vector<1x128xf32>
    tpu.vector_store %arg4[%c1_45, %c0_46], %93 {strides = array<i32>} : memref<8x128xf32, #tpu.memory_space<vmem>>, vector<1x128xf32>,
    %c2 = arith.constant 2 : index
    %c0_47 = arith.constant 0 : index
    %c0_48 = arith.constant 0 : index
    %94 = vector.load %arg3[%c2, %c0_47, %c0_48] : memref<8x8x32xf32, #tpu.memory_space<vmem>>, vector<1x8x32xf32>
    %95 = vector.shape_cast %94 : vector<1x8x32xf32> to vector<8x32xf32>
    %c2_49 = arith.constant 2 : index
    %c0_50 = arith.constant 0 : index
    %c0_51 = arith.constant 0 : index
    %96 = vector.load %arg1[%c2_49, %c0_50, %c0_51] : memref<8x8x1xi32, #tpu.memory_space<vmem>>, vector<1x8x1xi32>
    %97 = vector.shape_cast %96 : vector<1x8x1xi32> to vector<8x1xi32>
    %c2_52 = arith.constant 2 : index
    %c0_53 = arith.constant 0 : index
    %c0_54 = arith.constant 0 : index
    %98 = vector.load %arg2[%c2_52, %c0_53, %c0_54] : memref<8x1x8xi32, #tpu.memory_space<vmem>>, vector<1x1x8xi32>
    %99 = vector.shape_cast %98 : vector<1x1x8xi32> to vector<1x8xi32>
    %100 = vector.broadcast %97 : vector<8x1xi32> to vector<8x8xi32>
    %101 = vector.broadcast %99 : vector<1x8xi32> to vector<8x8xi32>
    %102 = arith.cmpi eq, %100, %101 : vector<8x8xi32>
    %cst_55 = arith.constant 1.000000e+00 : f32
    %cst_56 = arith.constant -1.000000e+00 : f32
    %103 = vector.broadcast %cst_55 : f32 to vector<8x8xf32>
    %104 = vector.broadcast %cst_56 : f32 to vector<8x8xf32>
    %105 = arith.select %102, %103, %104 : vector<8x8xi1>, vector<8x8xf32>
    %cst_57 = arith.constant dense<0.000000e+00> : vector<8x8xf32>
    %106 = tpu.matmul %95, %95, %cst_57 {dimension_numbers = #tpu.dot_dimension_numbers<[1], [1], [0], [0], [0, 0, 1, 0], [], []>, precision = #tpu.contract_precision<fp32>} : vector<8x32xf32>, vector<8x32xf32>, vector<8x8xf32> -> vector<8x8xf32>
    %cst_58 = arith.constant 0.000000e+00 : f32
    %107 = vector.broadcast %cst_58 : f32 to vector<8x8xf32>
    %108 = arith.select %2, %106, %107 : vector<8x8xi1>, vector<8x8xf32>
    %cst_59 = arith.constant dense<0.000000e+00> : vector<8xf32>
    %109 = vector.multi_reduction <add>, %108, %cst_59 [1] : vector<8x8xf32> to vector<8xf32>
    %110 = vector.shape_cast %109 : vector<8xf32> to vector<8x1xf32>
    %cst_60 = arith.constant dense<0.000000e+00> : vector<8xf32>
    %111 = vector.multi_reduction <add>, %108, %cst_60 [0] : vector<8x8xf32> to vector<8xf32>
    %112 = vector.shape_cast %111 : vector<8xf32> to vector<1x8xf32>
    %113 = vector.broadcast %110 : vector<8x1xf32> to vector<8x8xf32>
    %114 = vector.broadcast %112 : vector<1x8xf32> to vector<8x8xf32>
    %115 = arith.addf %113, %114 : vector<8x8xf32>
    %cst_61 = arith.constant 2.000000e+00 : f32
    %116 = vector.broadcast %cst_61 : f32 to vector<8x8xf32>
    %117 = arith.mulf %116, %106 : vector<8x8xf32>
    %118 = arith.subf %115, %117 : vector<8x8xf32>
    %cst_62 = arith.constant 0.000000e+00 : f32
    %119 = vector.broadcast %cst_62 : f32 to vector<8x8xf32>
    %120 = arith.maximumf %118, %119 : vector<8x8xf32>
    %cst_63 = arith.constant 4.400000e-01 : f32
    %121 = vector.broadcast %cst_63 : f32 to vector<8x8xf32>
    %122 = arith.subf %121, %120 : vector<8x8xf32>
    %123 = arith.mulf %105, %122 : vector<8x8xf32>
    %cst_64 = arith.constant 5.000000e-02 : f32
    %124 = vector.broadcast %cst_64 : f32 to vector<8x8xf32>
    %125 = arith.subf %124, %123 : vector<8x8xf32>
    %cst_65 = arith.constant 0.000000e+00 : f32
    %126 = vector.broadcast %cst_65 : f32 to vector<8x8xf32>
    %127 = arith.maximumf %125, %126 : vector<8x8xf32>
    %cst_66 = arith.constant 0.000000e+00 : f32
    %128 = vector.broadcast %cst_66 : f32 to vector<8x8xf32>
    %129 = arith.select %3, %127, %128 : vector<8x8xi1>, vector<8x8xf32>
    %130 = vector.shape_cast %129 : vector<8x8xf32> to vector<1x8x8xf32>
    %cst_67 = arith.constant dense<0.000000e+00> : vector<1xf32>
    %131 = vector.multi_reduction <add>, %130, %cst_67 [1, 2] : vector<1x8x8xf32> to vector<1xf32>
    %132 = vector.shape_cast %131 : vector<1xf32> to vector<1x1x1xf32>
    %133 = vector.extract %132[0, 0, 0] : f32 from vector<1x1x1xf32>
    %cst_68 = arith.constant 1.562500e-02 : f32
    %134 = arith.mulf %133, %cst_68 : f32
    %135 = vector.broadcast %134 : f32 to vector<128xf32>
    %c2_69 = arith.constant 2 : index
    %c0_70 = arith.constant 0 : index
    %136 = vector.load %arg4[%c2_69, %c0_70] : memref<8x128xf32, #tpu.memory_space<vmem>>, vector<1x128xf32>
    %137 = vector.shape_cast %136 : vector<1x128xf32> to vector<128xf32>
    %138 = vector.shape_cast %135 : vector<128xf32> to vector<1x128xf32>
    tpu.vector_store %arg4[%c2_69, %c0_70], %138 {strides = array<i32>} : memref<8x128xf32, #tpu.memory_space<vmem>>, vector<1x128xf32>,
    %c3 = arith.constant 3 : index
    %c0_71 = arith.constant 0 : index
    %c0_72 = arith.constant 0 : index
    %139 = vector.load %arg3[%c3, %c0_71, %c0_72] : memref<8x8x32xf32, #tpu.memory_space<vmem>>, vector<1x8x32xf32>
    %140 = vector.shape_cast %139 : vector<1x8x32xf32> to vector<8x32xf32>
    %c3_73 = arith.constant 3 : index
    %c0_74 = arith.constant 0 : index
    %c0_75 = arith.constant 0 : index
    %141 = vector.load %arg1[%c3_73, %c0_74, %c0_75] : memref<8x8x1xi32, #tpu.memory_space<vmem>>, vector<1x8x1xi32>
    %142 = vector.shape_cast %141 : vector<1x8x1xi32> to vector<8x1xi32>
    %c3_76 = arith.constant 3 : index
    %c0_77 = arith.constant 0 : index
    %c0_78 = arith.constant 0 : index
    %143 = vector.load %arg2[%c3_76, %c0_77, %c0_78] : memref<8x1x8xi32, #tpu.memory_space<vmem>>, vector<1x1x8xi32>
    %144 = vector.shape_cast %143 : vector<1x1x8xi32> to vector<1x8xi32>
    %145 = vector.broadcast %142 : vector<8x1xi32> to vector<8x8xi32>
    %146 = vector.broadcast %144 : vector<1x8xi32> to vector<8x8xi32>
    %147 = arith.cmpi eq, %145, %146 : vector<8x8xi32>
    %cst_79 = arith.constant 1.000000e+00 : f32
    %cst_80 = arith.constant -1.000000e+00 : f32
    %148 = vector.broadcast %cst_79 : f32 to vector<8x8xf32>
    %149 = vector.broadcast %cst_80 : f32 to vector<8x8xf32>
    %150 = arith.select %147, %148, %149 : vector<8x8xi1>, vector<8x8xf32>
    %cst_81 = arith.constant dense<0.000000e+00> : vector<8x8xf32>
    %151 = tpu.matmul %140, %140, %cst_81 {dimension_numbers = #tpu.dot_dimension_numbers<[1], [1], [0], [0], [0, 0, 1, 0], [], []>, precision = #tpu.contract_precision<fp32>} : vector<8x32xf32>, vector<8x32xf32>, vector<8x8xf32> -> vector<8x8xf32>
    %cst_82 = arith.constant 0.000000e+00 : f32
    %152 = vector.broadcast %cst_82 : f32 to vector<8x8xf32>
    %153 = arith.select %2, %151, %152 : vector<8x8xi1>, vector<8x8xf32>
    %cst_83 = arith.constant dense<0.000000e+00> : vector<8xf32>
    %154 = vector.multi_reduction <add>, %153, %cst_83 [1] : vector<8x8xf32> to vector<8xf32>
    %155 = vector.shape_cast %154 : vector<8xf32> to vector<8x1xf32>
    %cst_84 = arith.constant dense<0.000000e+00> : vector<8xf32>
    %156 = vector.multi_reduction <add>, %153, %cst_84 [0] : vector<8x8xf32> to vector<8xf32>
    %157 = vector.shape_cast %156 : vector<8xf32> to vector<1x8xf32>
    %158 = vector.broadcast %155 : vector<8x1xf32> to vector<8x8xf32>
    %159 = vector.broadcast %157 : vector<1x8xf32> to vector<8x8xf32>
    %160 = arith.addf %158, %159 : vector<8x8xf32>
    %cst_85 = arith.constant 2.000000e+00 : f32
    %161 = vector.broadcast %cst_85 : f32 to vector<8x8xf32>
    %162 = arith.mulf %161, %151 : vector<8x8xf32>
    %163 = arith.subf %160, %162 : vector<8x8xf32>
    %cst_86 = arith.constant 0.000000e+00 : f32
    %164 = vector.broadcast %cst_86 : f32 to vector<8x8xf32>
    %165 = arith.maximumf %163, %164 : vector<8x8xf32>
    %cst_87 = arith.constant 4.400000e-01 : f32
    %166 = vector.broadcast %cst_87 : f32 to vector<8x8xf32>
    %167 = arith.subf %166, %165 : vector<8x8xf32>
    %168 = arith.mulf %150, %167 : vector<8x8xf32>
    %cst_88 = arith.constant 5.000000e-02 : f32
    %169 = vector.broadcast %cst_88 : f32 to vector<8x8xf32>
    %170 = arith.subf %169, %168 : vector<8x8xf32>
    %cst_89 = arith.constant 0.000000e+00 : f32
    %171 = vector.broadcast %cst_89 : f32 to vector<8x8xf32>
    %172 = arith.maximumf %170, %171 : vector<8x8xf32>
    %cst_90 = arith.constant 0.000000e+00 : f32
    %173 = vector.broadcast %cst_90 : f32 to vector<8x8xf32>
    %174 = arith.select %3, %172, %173 : vector<8x8xi1>, vector<8x8xf32>
    %175 = vector.shape_cast %174 : vector<8x8xf32> to vector<1x8x8xf32>
    %cst_91 = arith.constant dense<0.000000e+00> : vector<1xf32>
    %176 = vector.multi_reduction <add>, %175, %cst_91 [1, 2] : vector<1x8x8xf32> to vector<1xf32>
    %177 = vector.shape_cast %176 : vector<1xf32> to vector<1x1x1xf32>
    %178 = vector.extract %177[0, 0, 0] : f32 from vector<1x1x1xf32>
    %cst_92 = arith.constant 1.562500e-02 : f32
    %179 = arith.mulf %178, %cst_92 : f32
    %180 = vector.broadcast %179 : f32 to vector<128xf32>
    %c3_93 = arith.constant 3 : index
    %c0_94 = arith.constant 0 : index
    %181 = vector.load %arg4[%c3_93, %c0_94] : memref<8x128xf32, #tpu.memory_space<vmem>>, vector<1x128xf32>
    %182 = vector.shape_cast %181 : vector<1x128xf32> to vector<128xf32>
    %183 = vector.shape_cast %180 : vector<128xf32> to vector<1x128xf32>
    tpu.vector_store %arg4[%c3_93, %c0_94], %183 {strides = array<i32>} : memref<8x128xf32, #tpu.memory_space<vmem>>, vector<1x128xf32>,
    %c4 = arith.constant 4 : index
    %c0_95 = arith.constant 0 : index
    %c0_96 = arith.constant 0 : index
    %184 = vector.load %arg3[%c4, %c0_95, %c0_96] : memref<8x8x32xf32, #tpu.memory_space<vmem>>, vector<1x8x32xf32>
    %185 = vector.shape_cast %184 : vector<1x8x32xf32> to vector<8x32xf32>
    %c4_97 = arith.constant 4 : index
    %c0_98 = arith.constant 0 : index
    %c0_99 = arith.constant 0 : index
    %186 = vector.load %arg1[%c4_97, %c0_98, %c0_99] : memref<8x8x1xi32, #tpu.memory_space<vmem>>, vector<1x8x1xi32>
    %187 = vector.shape_cast %186 : vector<1x8x1xi32> to vector<8x1xi32>
    %c4_100 = arith.constant 4 : index
    %c0_101 = arith.constant 0 : index
    %c0_102 = arith.constant 0 : index
    %188 = vector.load %arg2[%c4_100, %c0_101, %c0_102] : memref<8x1x8xi32, #tpu.memory_space<vmem>>, vector<1x1x8xi32>
    %189 = vector.shape_cast %188 : vector<1x1x8xi32> to vector<1x8xi32>
    %190 = vector.broadcast %187 : vector<8x1xi32> to vector<8x8xi32>
    %191 = vector.broadcast %189 : vector<1x8xi32> to vector<8x8xi32>
    %192 = arith.cmpi eq, %190, %191 : vector<8x8xi32>
    %cst_103 = arith.constant 1.000000e+00 : f32
    %cst_104 = arith.constant -1.000000e+00 : f32
    %193 = vector.broadcast %cst_103 : f32 to vector<8x8xf32>
    %194 = vector.broadcast %cst_104 : f32 to vector<8x8xf32>
    %195 = arith.select %192, %193, %194 : vector<8x8xi1>, vector<8x8xf32>
    %cst_105 = arith.constant dense<0.000000e+00> : vector<8x8xf32>
    %196 = tpu.matmul %185, %185, %cst_105 {dimension_numbers = #tpu.dot_dimension_numbers<[1], [1], [0], [0], [0, 0, 1, 0], [], []>, precision = #tpu.contract_precision<fp32>} : vector<8x32xf32>, vector<8x32xf32>, vector<8x8xf32> -> vector<8x8xf32>
    %cst_106 = arith.constant 0.000000e+00 : f32
    %197 = vector.broadcast %cst_106 : f32 to vector<8x8xf32>
    %198 = arith.select %2, %196, %197 : vector<8x8xi1>, vector<8x8xf32>
    %cst_107 = arith.constant dense<0.000000e+00> : vector<8xf32>
    %199 = vector.multi_reduction <add>, %198, %cst_107 [1] : vector<8x8xf32> to vector<8xf32>
    %200 = vector.shape_cast %199 : vector<8xf32> to vector<8x1xf32>
    %cst_108 = arith.constant dense<0.000000e+00> : vector<8xf32>
    %201 = vector.multi_reduction <add>, %198, %cst_108 [0] : vector<8x8xf32> to vector<8xf32>
    %202 = vector.shape_cast %201 : vector<8xf32> to vector<1x8xf32>
    %203 = vector.broadcast %200 : vector<8x1xf32> to vector<8x8xf32>
    %204 = vector.broadcast %202 : vector<1x8xf32> to vector<8x8xf32>
    %205 = arith.addf %203, %204 : vector<8x8xf32>
    %cst_109 = arith.constant 2.000000e+00 : f32
    %206 = vector.broadcast %cst_109 : f32 to vector<8x8xf32>
    %207 = arith.mulf %206, %196 : vector<8x8xf32>
    %208 = arith.subf %205, %207 : vector<8x8xf32>
    %cst_110 = arith.constant 0.000000e+00 : f32
    %209 = vector.broadcast %cst_110 : f32 to vector<8x8xf32>
    %210 = arith.maximumf %208, %209 : vector<8x8xf32>
    %cst_111 = arith.constant 4.400000e-01 : f32
    %211 = vector.broadcast %cst_111 : f32 to vector<8x8xf32>
    %212 = arith.subf %211, %210 : vector<8x8xf32>
    %213 = arith.mulf %195, %212 : vector<8x8xf32>
    %cst_112 = arith.constant 5.000000e-02 : f32
    %214 = vector.broadcast %cst_112 : f32 to vector<8x8xf32>
    %215 = arith.subf %214, %213 : vector<8x8xf32>
    %cst_113 = arith.constant 0.000000e+00 : f32
    %216 = vector.broadcast %cst_113 : f32 to vector<8x8xf32>
    %217 = arith.maximumf %215, %216 : vector<8x8xf32>
    %cst_114 = arith.constant 0.000000e+00 : f32
    %218 = vector.broadcast %cst_114 : f32 to vector<8x8xf32>
    %219 = arith.select %3, %217, %218 : vector<8x8xi1>, vector<8x8xf32>
    %220 = vector.shape_cast %219 : vector<8x8xf32> to vector<1x8x8xf32>
    %cst_115 = arith.constant dense<0.000000e+00> : vector<1xf32>
    %221 = vector.multi_reduction <add>, %220, %cst_115 [1, 2] : vector<1x8x8xf32> to vector<1xf32>
    %222 = vector.shape_cast %221 : vector<1xf32> to vector<1x1x1xf32>
    %223 = vector.extract %222[0, 0, 0] : f32 from vector<1x1x1xf32>
    %cst_116 = arith.constant 1.562500e-02 : f32
    %224 = arith.mulf %223, %cst_116 : f32
    %225 = vector.broadcast %224 : f32 to vector<128xf32>
    %c4_117 = arith.constant 4 : index
    %c0_118 = arith.constant 0 : index
    %226 = vector.load %arg4[%c4_117, %c0_118] : memref<8x128xf32, #tpu.memory_space<vmem>>, vector<1x128xf32>
    %227 = vector.shape_cast %226 : vector<1x128xf32> to vector<128xf32>
    %228 = vector.shape_cast %225 : vector<128xf32> to vector<1x128xf32>
    tpu.vector_store %arg4[%c4_117, %c0_118], %228 {strides = array<i32>} : memref<8x128xf32, #tpu.memory_space<vmem>>, vector<1x128xf32>,
    %c5 = arith.constant 5 : index
    %c0_119 = arith.constant 0 : index
    %c0_120 = arith.constant 0 : index
    %229 = vector.load %arg3[%c5, %c0_119, %c0_120] : memref<8x8x32xf32, #tpu.memory_space<vmem>>, vector<1x8x32xf32>
    %230 = vector.shape_cast %229 : vector<1x8x32xf32> to vector<8x32xf32>
    %c5_121 = arith.constant 5 : index
    %c0_122 = arith.constant 0 : index
    %c0_123 = arith.constant 0 : index
    %231 = vector.load %arg1[%c5_121, %c0_122, %c0_123] : memref<8x8x1xi32, #tpu.memory_space<vmem>>, vector<1x8x1xi32>
    %232 = vector.shape_cast %231 : vector<1x8x1xi32> to vector<8x1xi32>
    %c5_124 = arith.constant 5 : index
    %c0_125 = arith.constant 0 : index
    %c0_126 = arith.constant 0 : index
    %233 = vector.load %arg2[%c5_124, %c0_125, %c0_126] : memref<8x1x8xi32, #tpu.memory_space<vmem>>, vector<1x1x8xi32>
    %234 = vector.shape_cast %233 : vector<1x1x8xi32> to vector<1x8xi32>
    %235 = vector.broadcast %232 : vector<8x1xi32> to vector<8x8xi32>
    %236 = vector.broadcast %234 : vector<1x8xi32> to vector<8x8xi32>
    %237 = arith.cmpi eq, %235, %236 : vector<8x8xi32>
    %cst_127 = arith.constant 1.000000e+00 : f32
    %cst_128 = arith.constant -1.000000e+00 : f32
    %238 = vector.broadcast %cst_127 : f32 to vector<8x8xf32>
    %239 = vector.broadcast %cst_128 : f32 to vector<8x8xf32>
    %240 = arith.select %237, %238, %239 : vector<8x8xi1>, vector<8x8xf32>
    %cst_129 = arith.constant dense<0.000000e+00> : vector<8x8xf32>
    %241 = tpu.matmul %230, %230, %cst_129 {dimension_numbers = #tpu.dot_dimension_numbers<[1], [1], [0], [0], [0, 0, 1, 0], [], []>, precision = #tpu.contract_precision<fp32>} : vector<8x32xf32>, vector<8x32xf32>, vector<8x8xf32> -> vector<8x8xf32>
    %cst_130 = arith.constant 0.000000e+00 : f32
    %242 = vector.broadcast %cst_130 : f32 to vector<8x8xf32>
    %243 = arith.select %2, %241, %242 : vector<8x8xi1>, vector<8x8xf32>
    %cst_131 = arith.constant dense<0.000000e+00> : vector<8xf32>
    %244 = vector.multi_reduction <add>, %243, %cst_131 [1] : vector<8x8xf32> to vector<8xf32>
    %245 = vector.shape_cast %244 : vector<8xf32> to vector<8x1xf32>
    %cst_132 = arith.constant dense<0.000000e+00> : vector<8xf32>
    %246 = vector.multi_reduction <add>, %243, %cst_132 [0] : vector<8x8xf32> to vector<8xf32>
    %247 = vector.shape_cast %246 : vector<8xf32> to vector<1x8xf32>
    %248 = vector.broadcast %245 : vector<8x1xf32> to vector<8x8xf32>
    %249 = vector.broadcast %247 : vector<1x8xf32> to vector<8x8xf32>
    %250 = arith.addf %248, %249 : vector<8x8xf32>
    %cst_133 = arith.constant 2.000000e+00 : f32
    %251 = vector.broadcast %cst_133 : f32 to vector<8x8xf32>
    %252 = arith.mulf %251, %241 : vector<8x8xf32>
    %253 = arith.subf %250, %252 : vector<8x8xf32>
    %cst_134 = arith.constant 0.000000e+00 : f32
    %254 = vector.broadcast %cst_134 : f32 to vector<8x8xf32>
    %255 = arith.maximumf %253, %254 : vector<8x8xf32>
    %cst_135 = arith.constant 4.400000e-01 : f32
    %256 = vector.broadcast %cst_135 : f32 to vector<8x8xf32>
    %257 = arith.subf %256, %255 : vector<8x8xf32>
    %258 = arith.mulf %240, %257 : vector<8x8xf32>
    %cst_136 = arith.constant 5.000000e-02 : f32
    %259 = vector.broadcast %cst_136 : f32 to vector<8x8xf32>
    %260 = arith.subf %259, %258 : vector<8x8xf32>
    %cst_137 = arith.constant 0.000000e+00 : f32
    %261 = vector.broadcast %cst_137 : f32 to vector<8x8xf32>
    %262 = arith.maximumf %260, %261 : vector<8x8xf32>
    %cst_138 = arith.constant 0.000000e+00 : f32
    %263 = vector.broadcast %cst_138 : f32 to vector<8x8xf32>
    %264 = arith.select %3, %262, %263 : vector<8x8xi1>, vector<8x8xf32>
    %265 = vector.shape_cast %264 : vector<8x8xf32> to vector<1x8x8xf32>
    %cst_139 = arith.constant dense<0.000000e+00> : vector<1xf32>
    %266 = vector.multi_reduction <add>, %265, %cst_139 [1, 2] : vector<1x8x8xf32> to vector<1xf32>
    %267 = vector.shape_cast %266 : vector<1xf32> to vector<1x1x1xf32>
    %268 = vector.extract %267[0, 0, 0] : f32 from vector<1x1x1xf32>
    %cst_140 = arith.constant 1.562500e-02 : f32
    %269 = arith.mulf %268, %cst_140 : f32
    %270 = vector.broadcast %269 : f32 to vector<128xf32>
    %c5_141 = arith.constant 5 : index
    %c0_142 = arith.constant 0 : index
    %271 = vector.load %arg4[%c5_141, %c0_142] : memref<8x128xf32, #tpu.memory_space<vmem>>, vector<1x128xf32>
    %272 = vector.shape_cast %271 : vector<1x128xf32> to vector<128xf32>
    %273 = vector.shape_cast %270 : vector<128xf32> to vector<1x128xf32>
    tpu.vector_store %arg4[%c5_141, %c0_142], %273 {strides = array<i32>} : memref<8x128xf32, #tpu.memory_space<vmem>>, vector<1x128xf32>,
    %c6 = arith.constant 6 : index
    %c0_143 = arith.constant 0 : index
    %c0_144 = arith.constant 0 : index
    %274 = vector.load %arg3[%c6, %c0_143, %c0_144] : memref<8x8x32xf32, #tpu.memory_space<vmem>>, vector<1x8x32xf32>
    %275 = vector.shape_cast %274 : vector<1x8x32xf32> to vector<8x32xf32>
    %c6_145 = arith.constant 6 : index
    %c0_146 = arith.constant 0 : index
    %c0_147 = arith.constant 0 : index
    %276 = vector.load %arg1[%c6_145, %c0_146, %c0_147] : memref<8x8x1xi32, #tpu.memory_space<vmem>>, vector<1x8x1xi32>
    %277 = vector.shape_cast %276 : vector<1x8x1xi32> to vector<8x1xi32>
    %c6_148 = arith.constant 6 : index
    %c0_149 = arith.constant 0 : index
    %c0_150 = arith.constant 0 : index
    %278 = vector.load %arg2[%c6_148, %c0_149, %c0_150] : memref<8x1x8xi32, #tpu.memory_space<vmem>>, vector<1x1x8xi32>
    %279 = vector.shape_cast %278 : vector<1x1x8xi32> to vector<1x8xi32>
    %280 = vector.broadcast %277 : vector<8x1xi32> to vector<8x8xi32>
    %281 = vector.broadcast %279 : vector<1x8xi32> to vector<8x8xi32>
    %282 = arith.cmpi eq, %280, %281 : vector<8x8xi32>
    %cst_151 = arith.constant 1.000000e+00 : f32
    %cst_152 = arith.constant -1.000000e+00 : f32
    %283 = vector.broadcast %cst_151 : f32 to vector<8x8xf32>
    %284 = vector.broadcast %cst_152 : f32 to vector<8x8xf32>
    %285 = arith.select %282, %283, %284 : vector<8x8xi1>, vector<8x8xf32>
    %cst_153 = arith.constant dense<0.000000e+00> : vector<8x8xf32>
    %286 = tpu.matmul %275, %275, %cst_153 {dimension_numbers = #tpu.dot_dimension_numbers<[1], [1], [0], [0], [0, 0, 1, 0], [], []>, precision = #tpu.contract_precision<fp32>} : vector<8x32xf32>, vector<8x32xf32>, vector<8x8xf32> -> vector<8x8xf32>
    %cst_154 = arith.constant 0.000000e+00 : f32
    %287 = vector.broadcast %cst_154 : f32 to vector<8x8xf32>
    %288 = arith.select %2, %286, %287 : vector<8x8xi1>, vector<8x8xf32>
    %cst_155 = arith.constant dense<0.000000e+00> : vector<8xf32>
    %289 = vector.multi_reduction <add>, %288, %cst_155 [1] : vector<8x8xf32> to vector<8xf32>
    %290 = vector.shape_cast %289 : vector<8xf32> to vector<8x1xf32>
    %cst_156 = arith.constant dense<0.000000e+00> : vector<8xf32>
    %291 = vector.multi_reduction <add>, %288, %cst_156 [0] : vector<8x8xf32> to vector<8xf32>
    %292 = vector.shape_cast %291 : vector<8xf32> to vector<1x8xf32>
    %293 = vector.broadcast %290 : vector<8x1xf32> to vector<8x8xf32>
    %294 = vector.broadcast %292 : vector<1x8xf32> to vector<8x8xf32>
    %295 = arith.addf %293, %294 : vector<8x8xf32>
    %cst_157 = arith.constant 2.000000e+00 : f32
    %296 = vector.broadcast %cst_157 : f32 to vector<8x8xf32>
    %297 = arith.mulf %296, %286 : vector<8x8xf32>
    %298 = arith.subf %295, %297 : vector<8x8xf32>
    %cst_158 = arith.constant 0.000000e+00 : f32
    %299 = vector.broadcast %cst_158 : f32 to vector<8x8xf32>
    %300 = arith.maximumf %298, %299 : vector<8x8xf32>
    %cst_159 = arith.constant 4.400000e-01 : f32
    %301 = vector.broadcast %cst_159 : f32 to vector<8x8xf32>
    %302 = arith.subf %301, %300 : vector<8x8xf32>
    %303 = arith.mulf %285, %302 : vector<8x8xf32>
    %cst_160 = arith.constant 5.000000e-02 : f32
    %304 = vector.broadcast %cst_160 : f32 to vector<8x8xf32>
    %305 = arith.subf %304, %303 : vector<8x8xf32>
    %cst_161 = arith.constant 0.000000e+00 : f32
    %306 = vector.broadcast %cst_161 : f32 to vector<8x8xf32>
    %307 = arith.maximumf %305, %306 : vector<8x8xf32>
    %cst_162 = arith.constant 0.000000e+00 : f32
    %308 = vector.broadcast %cst_162 : f32 to vector<8x8xf32>
    %309 = arith.select %3, %307, %308 : vector<8x8xi1>, vector<8x8xf32>
    %310 = vector.shape_cast %309 : vector<8x8xf32> to vector<1x8x8xf32>
    %cst_163 = arith.constant dense<0.000000e+00> : vector<1xf32>
    %311 = vector.multi_reduction <add>, %310, %cst_163 [1, 2] : vector<1x8x8xf32> to vector<1xf32>
    %312 = vector.shape_cast %311 : vector<1xf32> to vector<1x1x1xf32>
    %313 = vector.extract %312[0, 0, 0] : f32 from vector<1x1x1xf32>
    %cst_164 = arith.constant 1.562500e-02 : f32
    %314 = arith.mulf %313, %cst_164 : f32
    %315 = vector.broadcast %314 : f32 to vector<128xf32>
    %c6_165 = arith.constant 6 : index
    %c0_166 = arith.constant 0 : index
    %316 = vector.load %arg4[%c6_165, %c0_166] : memref<8x128xf32, #tpu.memory_space<vmem>>, vector<1x128xf32>
    %317 = vector.shape_cast %316 : vector<1x128xf32> to vector<128xf32>
    %318 = vector.shape_cast %315 : vector<128xf32> to vector<1x128xf32>
    tpu.vector_store %arg4[%c6_165, %c0_166], %318 {strides = array<i32>} : memref<8x128xf32, #tpu.memory_space<vmem>>, vector<1x128xf32>,
    %c7 = arith.constant 7 : index
    %c0_167 = arith.constant 0 : index
    %c0_168 = arith.constant 0 : index
    %319 = vector.load %arg3[%c7, %c0_167, %c0_168] : memref<8x8x32xf32, #tpu.memory_space<vmem>>, vector<1x8x32xf32>
    %320 = vector.shape_cast %319 : vector<1x8x32xf32> to vector<8x32xf32>
    %c7_169 = arith.constant 7 : index
    %c0_170 = arith.constant 0 : index
    %c0_171 = arith.constant 0 : index
    %321 = vector.load %arg1[%c7_169, %c0_170, %c0_171] : memref<8x8x1xi32, #tpu.memory_space<vmem>>, vector<1x8x1xi32>
    %322 = vector.shape_cast %321 : vector<1x8x1xi32> to vector<8x1xi32>
    %c7_172 = arith.constant 7 : index
    %c0_173 = arith.constant 0 : index
    %c0_174 = arith.constant 0 : index
    %323 = vector.load %arg2[%c7_172, %c0_173, %c0_174] : memref<8x1x8xi32, #tpu.memory_space<vmem>>, vector<1x1x8xi32>
    %324 = vector.shape_cast %323 : vector<1x1x8xi32> to vector<1x8xi32>
    %325 = vector.broadcast %322 : vector<8x1xi32> to vector<8x8xi32>
    %326 = vector.broadcast %324 : vector<1x8xi32> to vector<8x8xi32>
    %327 = arith.cmpi eq, %325, %326 : vector<8x8xi32>
    %cst_175 = arith.constant 1.000000e+00 : f32
    %cst_176 = arith.constant -1.000000e+00 : f32
    %328 = vector.broadcast %cst_175 : f32 to vector<8x8xf32>
    %329 = vector.broadcast %cst_176 : f32 to vector<8x8xf32>
    %330 = arith.select %327, %328, %329 : vector<8x8xi1>, vector<8x8xf32>
    %cst_177 = arith.constant dense<0.000000e+00> : vector<8x8xf32>
    %331 = tpu.matmul %320, %320, %cst_177 {dimension_numbers = #tpu.dot_dimension_numbers<[1], [1], [0], [0], [0, 0, 1, 0], [], []>, precision = #tpu.contract_precision<fp32>} : vector<8x32xf32>, vector<8x32xf32>, vector<8x8xf32> -> vector<8x8xf32>
    %cst_178 = arith.constant 0.000000e+00 : f32
    %332 = vector.broadcast %cst_178 : f32 to vector<8x8xf32>
    %333 = arith.select %2, %331, %332 : vector<8x8xi1>, vector<8x8xf32>
    %cst_179 = arith.constant dense<0.000000e+00> : vector<8xf32>
    %334 = vector.multi_reduction <add>, %333, %cst_179 [1] : vector<8x8xf32> to vector<8xf32>
    %335 = vector.shape_cast %334 : vector<8xf32> to vector<8x1xf32>
    %cst_180 = arith.constant dense<0.000000e+00> : vector<8xf32>
    %336 = vector.multi_reduction <add>, %333, %cst_180 [0] : vector<8x8xf32> to vector<8xf32>
    %337 = vector.shape_cast %336 : vector<8xf32> to vector<1x8xf32>
    %338 = vector.broadcast %335 : vector<8x1xf32> to vector<8x8xf32>
    %339 = vector.broadcast %337 : vector<1x8xf32> to vector<8x8xf32>
    %340 = arith.addf %338, %339 : vector<8x8xf32>
    %cst_181 = arith.constant 2.000000e+00 : f32
    %341 = vector.broadcast %cst_181 : f32 to vector<8x8xf32>
    %342 = arith.mulf %341, %331 : vector<8x8xf32>
    %343 = arith.subf %340, %342 : vector<8x8xf32>
    %cst_182 = arith.constant 0.000000e+00 : f32
    %344 = vector.broadcast %cst_182 : f32 to vector<8x8xf32>
    %345 = arith.maximumf %343, %344 : vector<8x8xf32>
    %cst_183 = arith.constant 4.400000e-01 : f32
    %346 = vector.broadcast %cst_183 : f32 to vector<8x8xf32>
    %347 = arith.subf %346, %345 : vector<8x8xf32>
    %348 = arith.mulf %330, %347 : vector<8x8xf32>
    %cst_184 = arith.constant 5.000000e-02 : f32
    %349 = vector.broadcast %cst_184 : f32 to vector<8x8xf32>
    %350 = arith.subf %349, %348 : vector<8x8xf32>
    %cst_185 = arith.constant 0.000000e+00 : f32
    %351 = vector.broadcast %cst_185 : f32 to vector<8x8xf32>
    %352 = arith.maximumf %350, %351 : vector<8x8xf32>
    %cst_186 = arith.constant 0.000000e+00 : f32
    %353 = vector.broadcast %cst_186 : f32 to vector<8x8xf32>
    %354 = arith.select %3, %352, %353 : vector<8x8xi1>, vector<8x8xf32>
    %355 = vector.shape_cast %354 : vector<8x8xf32> to vector<1x8x8xf32>
    %cst_187 = arith.constant dense<0.000000e+00> : vector<1xf32>
    %356 = vector.multi_reduction <add>, %355, %cst_187 [1, 2] : vector<1x8x8xf32> to vector<1xf32>
    %357 = vector.shape_cast %356 : vector<1xf32> to vector<1x1x1xf32>
    %358 = vector.extract %357[0, 0, 0] : f32 from vector<1x1x1xf32>
    %cst_188 = arith.constant 1.562500e-02 : f32
    %359 = arith.mulf %358, %cst_188 : f32
    %360 = vector.broadcast %359 : f32 to vector<128xf32>
    %c7_189 = arith.constant 7 : index
    %c0_190 = arith.constant 0 : index
    %361 = vector.load %arg4[%c7_189, %c0_190] : memref<8x128xf32, #tpu.memory_space<vmem>>, vector<1x128xf32>
    %362 = vector.shape_cast %361 : vector<1x128xf32> to vector<128xf32>
    %363 = vector.shape_cast %360 : vector<128xf32> to vector<1x128xf32>
    tpu.vector_store %arg4[%c7_189, %c0_190], %363 {strides = array<i32>} : memref<8x128xf32, #tpu.memory_space<vmem>>, vector<1x128xf32>,
    return
  }
  func.func @transform_0(%arg0: i32) -> (i32, i32, i32) {
    %c0_i32 = arith.constant 0 : i32
    %c0_i32_0 = arith.constant 0 : i32
    %c0_i32_1 = arith.constant 0 : i32
    return %arg0, %c0_i32, %c0_i32_0 : i32, i32, i32
  }
  func.func @transform_1(%arg0: i32) -> (i32, i32, i32) {
    %c0_i32 = arith.constant 0 : i32
    %c0_i32_0 = arith.constant 0 : i32
    %c0_i32_1 = arith.constant 0 : i32
    return %arg0, %c0_i32, %c0_i32_0 : i32, i32, i32
  }
  func.func @transform_2(%arg0: i32) -> (i32, i32, i32) {
    %c0_i32 = arith.constant 0 : i32
    %c0_i32_0 = arith.constant 0 : i32
    %c0_i32_1 = arith.constant 0 : i32
    return %arg0, %c0_i32, %c0_i32_0 : i32, i32, i32
  }
  func.func @transform_3(%arg0: i32) -> (i32, i32) {
    %c0_i32 = arith.constant 0 : i32
    %c0_i32_0 = arith.constant 0 : i32
    return %arg0, %c0_i32 : i32, i32
  }
}

</mosaic_0001>

<bundles_post_ra>
// kernel: tpu_custom_call.1
= control target key start
LH: loop header
LB: loop body
LE: loop exit
PB: predicated region body
PF: predicated region fallthrough
CT: control target
= control target key end

     0   :  { %vm30_vm0 = vcmask 261120   ;;  %s1965_s0 = inlined_call_operand.vmem [shape: s32[8,8,1], index: 0, kind: input, shape index: {}]   ;;  %s1966_s1 = inlined_call_operand.vmem [shape: s32[8,1,8], index: 1, kind: input, shape index: {}]   ;;  %s1967_s2 = inlined_call_operand.vmem [shape: f32[8,8,32], index: 2, kind: input, shape index: {}]   ;;  %s1968_s3 = inlined_call_operand.hbm [shape: f32[8,128], index: 3, kind: output, shape index: {}]  }
   0x1   :  { %v21_v0 = vld [vmem:[%s1967_s2] sm:$0xff]  ;;  %v1580_v1 = vld [vmem:[%s1967_s2 + $0x8] sm:$0xff]  ;;  %v1583_v2 = vld [vmem:[%s1967_s2 + $0x10] sm:$0xff] }
   0x2   :  { %v32_v3 = vsel %vm30_vm0, %v21_v0, 0  ;;  %v226_v4 = vsel %vm30_vm0, %v1580_v1, 0  ;;  %v419_v5 = vsel %vm30_vm0, %v1583_v2, 0  ;;  %v1586_v6 = vld [vmem:[%s1967_s2 + $0x18] sm:$0xff] }
   0x3   :  { %v49_v7 = vand.u32 4294901760, %v32_v3  ;;  %v243_v8 = vand.u32 4294901760, %v226_v4  ;;  %v612_v9 = vsel %vm30_vm0, %v1586_v6, 0  ;;  %v1696_v10 = vand.u32 4294901760, %v419_v5 }
   0x4   :  { %v1698_v13 = vand.u32 4294901760, %v612_v9 }
   0x5   :  { %v52_v11 = vsub.f32 %v32_v3, %v49_v7  ;;  %50 = vmatpush.xpose.msra.mxu0 %v49_v7  ;;  %126 = vmatpush.xpose.msra.mxu3 %v49_v7  ;;  %v246_v12 = vsub.f32 %v226_v4, %v243_v8 }
   0x6   :  { %8 = vsyncpa [#allocation3], 0  ;;  %v439_v18 = vsub.f32 %v419_v5, %v1696_v10  ;;  %v1702_v19 = vsub.f32 %v612_v9, %v1698_v13  ;;  %v1589_v28 = vld [vmem:[%s1967_s2 + $0x20] sm:$0xff]  ;;  %v1592_v29 = vld [vmem:[%s1967_s2 + $0x28] sm:$0xff]  ;;  %v1657_v58 = vmov 0   ;;  %v15_v1 = vlaneseq  ;;  %s1659_s16 = smov [#allocation2]  }
   0x7   :  { %103 = vmatpush.xpose.msra.mxu2 %v52_v11  ;;  %v53_v14 = vand.u32 4294901760, %v52_v11  ;;  %v247_v15 = vand.u32 4294901760, %v246_v12  ;;  %v805_v30 = vsel %vm30_vm0, %v1589_v28, 0  ;;  %v998_v31 = vsel %vm30_vm0, %v1592_v29, 0  ;;  %v1595_v42 = vld [vmem:[%s1967_s2 + $0x30] sm:$0xff]  ;;  %v1598_v43 = vld [vmem:[%s1967_s2 + $0x38] sm:$0xff]  ;;  %1620 = vset.pattern.permute.xlu0 %v1657_v58 }
   0x8   :  { %v440_v22 = vand.u32 4294901760, %v439_v18  ;;  %v1705_v23 = vand.u32 4294901760, %v1702_v19  ;;  %v1720_v32 = vand.u32 4294901760, %v805_v30  ;;  %v1722_v33 = vand.u32 4294901760, %v998_v31  ;;  %v22_v56 = vld [vmem:[%s1965_s0] sm:$0xff]  ;;  %v1584_v57 = vld [vmem:[%s1965_s0 + $0x10] sm:$0xff]  ;;  %1622 = vset.pattern.permute.xlu2 %v1657_v58  ;;  %1621 = vset.pattern.permute.xlu1 %v1657_v58 }
   0x9   :  { %v54_v16 = vsub.f32 %v52_v11, %v53_v14  ;;  %130 = vmatmul.f32.vlgmr.msra.gmra.mxu3 %v53_v14  ;;  %152 = vmatpush.xpose.msrb.mxu0 %v53_v14  ;;  %v248_v17 = vsub.f32 %v246_v12, %v247_v15  ;;  %v1191_v44 = vsel %vm30_vm0, %v1595_v42, 0  ;;  %v1384_v45 = vsel %vm30_vm0, %v1598_v43, 0  ;;  %v1581_v59 = vld [vmem:[%s1965_s0 + $0x8] sm:$0xff]  ;;  %v1587_v60 = vld [vmem:[%s1965_s0 + $0x18] sm:$0xff]  ;;  %s1569_s17 = sshll.u32 %s1659_s16, 4  ;;  %s1571_s19 = sshll.u32 %s1968_s3, 4  ;;  %s1570_s17 = int_to_ptr.vmem [resolvable:$true] %s1569_s17  ;;  %s1572_s19 = int_to_ptr.hbm [resolvable:$true] %s1571_s19 }
   0xa   :  { %106 = vmatmul.f32.vlgmr.msra.gmra.mxu2 %v52_v11  ;;  %v441_v24 = vsub.f32 %v439_v18, %v440_v22  ;;  %v634_v25 = vsub.f32 %v1702_v19, %v1705_v23  ;;  %v825_v34 = vsub.f32 %v805_v30, %v1720_v32  ;;  %v1728_v35 = vsub.f32 %v998_v31, %v1722_v33 }
   0xb   :  { %244 = vmatpush.xpose.msrb.mxu2 %v243_v8  ;;  %v55_v20 = vand.u32 4294901760, %v54_v16  ;;  %v249_v21 = vand.u32 4294901760, %v248_v17  ;;  %v1208_v46 = vand.u32 4294901760, %v1191_v44  ;;  %v1401_v47 = vand.u32 4294901760, %v1384_v45  ;;  %25 = vperm.xlu0 %1620, %v22_v56  }
   0xc   :  { %v442_v26 = vand.u32 4294901760, %v441_v24  ;;  %v635_v27 = vand.u32 4294901760, %v634_v25  ;;  %v826_v36 = vand.u32 4294901760, %v825_v34  ;;  %v1733_v37 = vand.u32 4294901760, %v1728_v35  ;;  %413 = vperm.xlu2 %1622, %v1584_v57   ;;  %220 = vperm.xlu1 %1621, %v1581_v59  }
   0xd   :  { %80 = vmatpush.xpose.msra.mxu1 %v55_v20  ;;  %56 = vmatmul.f32.vlgmr.msra.gmra.mxu0 %v55_v20  ;;  %v1211_v48 = vsub.f32 %v1191_v44, %v1208_v46  ;;  %v1404_v49 = vsub.f32 %v1384_v45, %v1401_v47  ;;  %v1782_v4 = vshrl.u32 %v15_v1, 7  ;;  %v1784_v5 = vand.u32 127, %v15_v1 }
   0xe   :  { %274 = vmatpush.xpose.msrb.mxu3 %v249_v21  ;;  %297 = vmatpush.xpose.msra.mxu0 %v246_v12  ;;  %v827_v38 = vsub.f32 %v825_v34, %v826_v36  ;;  %v1020_v39 = vsub.f32 %v1728_v35, %v1733_v37  ;;  %vm181_vm2 = vcmask 64512  }
   0xf   :  { %346 = vmatpush.xpose.msra.mxu2 %v247_v15  ;;  %v1212_v50 = vand.u32 4294901760, %v1211_v48  ;;  %v1405_v51 = vand.u32 4294901760, %v1404_v49  ;;  %vm1788_vm1 = vcmp.eq.s32.totalorder %v1782_v4, %v1784_v5  ;;  %vm1892_vm4 = vcmp.gt.s32.totalorder %v1784_v5, %v1782_v4 }
  0x10   :  { %82 = vmatmul.f32.vlgmr.msra.gmra.mxu1 %v49_v7  ;;  %v828_v40 = vand.u32 4294901760, %v827_v38  ;;  %v1021_v41 = vand.u32 4294901760, %v1020_v39 }
  0x11   :  { %174 = vmatpush.xpose.msrb.mxu1 %v49_v7  ;;  %276 = vmatmul.f32.vlgmr.msrb.gmra.mxu3 %v243_v8  ;;  %v1213_v52 = vsub.f32 %v1211_v48, %v1212_v50  ;;  %v1406_v53 = vsub.f32 %v1404_v49, %v1405_v51 }
  0x12   :  { %368 = vmatpush.xpose.msra.mxu3 %v243_v8  ;;  %250 = vmatmul.f32.vlgmr.msrb.gmra.mxu2 %v249_v21 }
  0x13   :  { %490 = vmatpush.xpose.msrb.mxu2 %v439_v18  ;;  %v1214_v54 = vand.u32 4294901760, %v1213_v52  ;;  %v1407_v55 = vand.u32 4294901760, %v1406_v53 }
  0x14   :  { %606 = vperm.xlu1 %1621, %v1587_v60  }
  0x15   :  { %320 = vmatpush.xpose.msra.mxu1 %v243_v8  ;;  %154 = vmatmul.f32.vlgmr.msrb.gmra.mxu0 %v49_v7 }
  0x16   :  { %513 = vmatpush.xpose.msrb.mxu3 %v1696_v10  ;;  %437 = vmatpush.xpose.msrb.mxu0 %v1696_v10 }
  0x18   :  { %176 = vmatmul.f32.vlgmr.msrb.gmra.mxu1 %v49_v7 }
  0x19   :  { %370 = vmatmul.f32.vlgmr.msra.gmra.mxu3 %v243_v8  ;;  %467 = vmatpush.xpose.msrb.mxu1 %v442_v26 }
  0x1a   :  { %348 = vmatmul.f32.vlgmr.msra.gmra.mxu2 %v243_v8  ;;  %660 = vmatpush.xpose.msra.mxu3 %v635_v27 }
  0x1b   :  { %630 = vmatpush.xpose.msra.mxu2 %v1698_v13 }
  0x1d   :  { %300 = vmatmul.f32.vlgmr.msra.gmra.mxu0 %v246_v12 }
  0x1e   :  { %539 = vmatpush.xpose.msra.mxu0 %v440_v22 }
  0x20   :  { %324 = vmatmul.f32.vlgmr.msra.gmra.mxu1 %v247_v15 }
  0x21   :  { %517 = vmatmul.f32.vlgmr.msrb.gmra.mxu3 %v440_v22  ;;  %561 = vmatpush.xpose.msra.mxu1 %v1696_v10 }
  0x22   :  { %493 = vmatmul.f32.vlgmr.msrb.gmra.mxu2 %v439_v18  ;;  %754 = vmatpush.xpose.msrb.mxu3 %v1698_v13 }
  0x23   :  { %732 = vmatpush.xpose.msrb.mxu2 %v1705_v23 }
  0x25   :  { %443 = vmatmul.f32.vlgmr.msrb.gmra.mxu0 %v442_v26 }
  0x26   :  { %683 = vmatpush.xpose.msrb.mxu0 %v1702_v19 }
  0x28   :  { %469 = vmatmul.f32.vlgmr.msrb.gmra.mxu1 %v1696_v10 }
  0x29   :  { %662 = vmatmul.f32.vlgmr.msra.gmra.mxu3 %v1698_v13  ;;  %706 = vmatpush.xpose.msrb.mxu1 %v1698_v13 }
  0x2a   :  { %636 = vmatmul.f32.vlgmr.msra.gmra.mxu2 %v635_v27  ;;  %899 = vmatpush.xpose.msra.mxu3 %v1720_v32 }
  0x2b   :  { %876 = vmatpush.xpose.msra.mxu2 %v825_v34 }
  0x2d   :  { %541 = vmatmul.f32.vlgmr.msra.gmra.mxu0 %v1696_v10 }
  0x2e   :  { %823 = vmatpush.xpose.msra.mxu0 %v1720_v32 }
  0x30   :  { %563 = vmatmul.f32.vlgmr.msra.gmra.mxu1 %v1696_v10 }
  0x31   :  { %756 = vmatmul.f32.vlgmr.msrb.gmra.mxu3 %v1698_v13  ;;  %853 = vmatpush.xpose.msra.mxu1 %v828_v40 }
  0x32   :  { %734 = vmatmul.f32.vlgmr.msrb.gmra.mxu2 %v1698_v13  ;;  %1046 = vmatpush.xpose.msrb.mxu3 %v1021_v41 }
  0x33   :  { %1016 = vmatpush.xpose.msrb.mxu2 %v1722_v33 }
  0x35   :  { %686 = vmatmul.f32.vlgmr.msrb.gmra.mxu0 %v1702_v19 }
  0x36   :  { %925 = vmatpush.xpose.msrb.mxu0 %v826_v36 }
  0x38   :  { %710 = vmatmul.f32.vlgmr.msrb.gmra.mxu1 %v1705_v23 }
  0x39   :  { %903 = vmatmul.f32.vlgmr.msra.gmra.mxu3 %v826_v36  ;;  %947 = vmatpush.xpose.msrb.mxu1 %v1720_v32 }
  0x3a   :  { %879 = vmatmul.f32.vlgmr.msra.gmra.mxu2 %v825_v34  ;;  %1140 = vmatpush.xpose.msra.mxu3 %v1722_v33 }
  0x3b   :  { %1118 = vmatpush.xpose.msra.mxu2 %v1733_v37 }
  0x3d   :  { %829 = vmatmul.f32.vlgmr.msra.gmra.mxu0 %v828_v40 }
  0x3e   :  { %1069 = vmatpush.xpose.msra.mxu0 %v1728_v35 }
  0x40   :  { %855 = vmatmul.f32.vlgmr.msra.gmra.mxu1 %v1720_v32 }
  0x41   :  { %1048 = vmatmul.f32.vlgmr.msrb.gmra.mxu3 %v1722_v33  ;;  %1092 = vmatpush.xpose.msra.mxu1 %v1722_v33 }
  0x42   :  { %1022 = vmatmul.f32.vlgmr.msrb.gmra.mxu2 %v1021_v41  ;;  %1285 = vmatpush.xpose.msrb.mxu3 %v1208_v46 }
  0x43   :  { %1262 = vmatpush.xpose.msrb.mxu2 %v1211_v48 }
  0x45   :  { %927 = vmatmul.f32.vlgmr.msrb.gmra.mxu0 %v1720_v32 }
  0x46   :  { %1209 = vmatpush.xpose.msrb.mxu0 %v1208_v46 }
  0x48   :  { %949 = vmatmul.f32.vlgmr.msrb.gmra.mxu1 %v1720_v32 }
  0x49   :  { %1142 = vmatmul.f32.vlgmr.msra.gmra.mxu3 %v1722_v33  ;;  %1239 = vmatpush.xpose.msrb.mxu1 %v1214_v54 }
  0x4a   :  { %1120 = vmatmul.f32.vlgmr.msra.gmra.mxu2 %v1722_v33  ;;  %1432 = vmatpush.xpose.msra.mxu3 %v1407_v55 }
  0x4b   :  { %1402 = vmatpush.xpose.msra.mxu2 %v1401_v47 }
  0x4d   :  { %1072 = vmatmul.f32.vlgmr.msra.gmra.mxu0 %v1728_v35  ;;  %v1593_v35 = vld [vmem:[%s1965_s0 + $0x28] sm:$0xff] }
  0x4e   :  { %1311 = vmatpush.xpose.msra.mxu0 %v1212_v50 }
  0x50   :  { %1096 = vmatmul.f32.vlgmr.msra.gmra.mxu1 %v1733_v37 }
  0x51   :  { %1289 = vmatmul.f32.vlgmr.msrb.gmra.mxu3 %v1212_v50  ;;  %1333 = vmatpush.xpose.msra.mxu1 %v1208_v46 }
  0x52   :  { %1265 = vmatmul.f32.vlgmr.msrb.gmra.mxu2 %v1211_v48  ;;  %1526 = vmatpush.xpose.msrb.mxu3 %v1401_v47 }
  0x53   :  { %1504 = vmatpush.xpose.msrb.mxu2 %v1405_v51 }
  0x55   :  { %1215 = vmatmul.f32.vlgmr.msrb.gmra.mxu0 %v1214_v54 }
  0x56   :  { %1455 = vmatpush.xpose.msrb.mxu0 %v1404_v49 }
  0x58   :  { %1241 = vmatmul.f32.vlgmr.msrb.gmra.mxu1 %v1208_v46 }
  0x59   :  { %1434 = vmatmul.f32.vlgmr.msra.gmra.mxu3 %v1401_v47  ;;  %1478 = vmatpush.xpose.msrb.mxu1 %v1401_v47 }
  0x5a   :  { %1408 = vmatmul.f32.vlgmr.msra.gmra.mxu2 %v1407_v55 }
  0x5d   :  { %1313 = vmatmul.f32.vlgmr.msra.gmra.mxu0 %v1208_v46 }
  0x60   :  { %1335 = vmatmul.f32.vlgmr.msra.gmra.mxu1 %v1208_v46 }
  0x61   :  { %1528 = vmatmul.f32.vlgmr.msrb.gmra.mxu3 %v1401_v47 }
  0x62   :  { %1506 = vmatmul.f32.vlgmr.msrb.gmra.mxu2 %v1401_v47 }
  0x65   :  { %1458 = vmatmul.f32.vlgmr.msrb.gmra.mxu0 %v1404_v49 }
  0x68   :  { %1482 = vmatmul.f32.vlgmr.msrb.gmra.mxu1 %v1405_v51 }
  0x7d   :  { %v26_v10 = vpop.permute.xlu0 %25 }
  0x8a   :  { %v57_v61 = vpop.f32.mrf.mxu0 }
  0x8c   :  { %v131_v62 = vpop.f32.mrf.mxu3 }
  0x8d   :  { %v83_v63 = vpop.f32.mrf.mxu1  ;;  %v107_v0 = vpop.f32.mrf.mxu2 }
  0x8e   :  { %v84_v2 = vadd.f32 %v83_v63, %v57_v61 }
  0x90   :  { %v108_v3 = vadd.f32 %v107_v0, %v84_v2  ;;  %v1596_v2 = vld [vmem:[%s1965_s0 + $0x30] sm:$0xff] }
  0x92   :  { %v132_v6 = vadd.f32 %v131_v62, %v108_v3  ;;  %v155_v7 = vpop.f32.mrf.mxu0 }
  0x94   :  { %v156_v8 = vadd.f32 %v155_v7, %v132_v6  ;;  %v277_v9 = vpop.f32.mrf.mxu3 }
  0x95   :  { %v177_v11 = vpop.f32.mrf.mxu1  ;;  %v251_v12 = vpop.f32.mrf.mxu2 }
  0x96   :  { %v1792_v13 = vadd.f32 %v177_v11, %v156_v8  ;;  %v278_v14 = vadd.f32 %v277_v9, %v251_v12 }
  0x98   :  { %v180_v15 = vsel %vm1788_vm1, %v1792_v13, 0.0 }
  0x99   :  { %v1798_v16 = vsel %vm181_vm2, %v180_v15, 0.0 }
  0x9a   :  { %183 = vadd.xlane.f32.xlu0 %v1798_v16  ;;  %v301_v17 = vpop.f32.mrf.mxu0 }
  0x9b   :  { %v302_v18 = vadd.f32 %v301_v17, %v278_v14  ;;  %v1590_v17 = vld [vmem:[%s1965_s0 + $0x20] sm:$0xff] }
  0x9c   :  { %v371_v19 = vpop.f32.mrf.mxu3 }
  0x9d   :  { %v325_v20 = vpop.f32.mrf.mxu1  ;;  %v349_v21 = vpop.f32.mrf.mxu2 }
  0x9e   :  { %v326_v22 = vadd.f32 %v325_v20, %v302_v18 }
  0xa0   :  { %v350_v23 = vadd.f32 %v349_v21, %v326_v22 }
  0xa2   :  { %v1801_v24 = vadd.f32 %v371_v19, %v350_v23  ;;  %v444_v25 = vpop.f32.mrf.mxu0 }
  0xa4   :  { %v374_v26 = vsel %vm1788_vm1, %v1801_v24, 0.0  ;;  %v518_v27 = vpop.f32.mrf.mxu3 }
  0xa5   :  { %v470_v28 = vpop.f32.mrf.mxu1  ;;  %v1807_v29 = vsel %vm181_vm2, %v374_v26, 0.0  ;;  %v494_v30 = vpop.f32.mrf.mxu2 }
  0xa6   :  { %v471_v31 = vadd.f32 %v470_v28, %v444_v25  ;;  %376 = vadd.xlane.f32.xlu2 %v1807_v29 }
  0xa8   :  { %v495_v32 = vadd.f32 %v494_v30, %v471_v31 }
  0xaa   :  { %v519_v33 = vadd.f32 %v518_v27, %v495_v32  ;;  %v542_v34 = vpop.f32.mrf.mxu0 }
  0xac   :  { %v543_v36 = vadd.f32 %v542_v34, %v519_v33  ;;  %v663_v37 = vpop.f32.mrf.mxu3 }
  0xad   :  { %v564_v38 = vpop.f32.mrf.mxu1  ;;  %v637_v39 = vpop.f32.mrf.mxu2 }
  0xae   :  { %v1813_v40 = vadd.f32 %v564_v38, %v543_v36  ;;  %992 = vperm.xlu0 %1620, %v1593_v35   ;;  %v664_v41 = vadd.f32 %v663_v37, %v637_v39 }
  0xb0   :  { %v567_v42 = vsel %vm1788_vm1, %v1813_v40, 0.0 }
  0xb1   :  { %v1819_v43 = vsel %vm181_vm2, %v567_v42, 0.0 }
  0xb2   :  { %569 = vadd.xlane.f32.xlu1 %v1819_v43  ;;  %v687_v44 = vpop.f32.mrf.mxu0 }
  0xb3   :  { %v688_v45 = vadd.f32 %v687_v44, %v664_v41 }
  0xb4   :  { %v757_v46 = vpop.f32.mrf.mxu3 }
  0xb5   :  { %v711_v47 = vpop.f32.mrf.mxu1  ;;  %v735_v48 = vpop.f32.mrf.mxu2 }
  0xb6   :  { %v712_v49 = vadd.f32 %v711_v47, %v688_v45 }
  0xb8   :  { %v736_v50 = vadd.f32 %v735_v48, %v712_v49 }
  0xba   :  { %v1822_v51 = vadd.f32 %v757_v46, %v736_v50  ;;  %v830_v52 = vpop.f32.mrf.mxu0 }
  0xbc   :  { %v760_v53 = vsel %vm1788_vm1, %v1822_v51, 0.0  ;;  %v904_v54 = vpop.f32.mrf.mxu3 }
  0xbd   :  { %v856_v55 = vpop.f32.mrf.mxu1  ;;  %v1828_v56 = vsel %vm181_vm2, %v760_v53, 0.0  ;;  %v880_v57 = vpop.f32.mrf.mxu2 }
  0xbe   :  { %762 = vadd.xlane.f32.xlu2 %v1828_v56  ;;  %v857_v58 = vadd.f32 %v856_v55, %v830_v52 }
  0xc0   :  { %v881_v60 = vadd.f32 %v880_v57, %v857_v58  ;;  %v1599_v58 = vld [vmem:[%s1965_s0 + $0x38] sm:$0xff] }
  0xc2   :  { %v928_v59 = vpop.f32.mrf.mxu0  ;;  %v905_v0 = vadd.f32 %v904_v54, %v881_v60  ;;  %v185_v54 = vrot.slane %v1798_v16, 4 }
  0xc4   :  { %v1049_v61 = vpop.f32.mrf.mxu3  ;;  %v929_v6 = vadd.f32 %v928_v59, %v905_v0  ;;  %v186_v55 = vadd.f32 %v185_v54, %v1798_v16  ;;  %v378_v59 = vrot.slane %v1807_v29, 4  ;;  %v1623_v16 = vld [vmem:[%s1966_s1] ss:$0 sm:$0xff]  ;;  %v1624_v54 = vld [vmem:[%s1966_s1 + $0x2] ss:$0 sm:$0xff] }
  0xc5   :  { %v950_v62 = vpop.f32.mrf.mxu1  ;;  %v1023_v63 = vpop.f32.mrf.mxu2  ;;  %vm28_vm3 = vcmp.eq.s32.totalorder %v26_v10, %v1623_v16  ;;  %v771_v16 = vmul.f32 2.0, %v1822_v51 }
  0xc6   :  { %v1050_v1 = vadd.f32 %v1049_v61, %v1023_v63  ;;  %v1834_v12 = vadd.f32 %v950_v62, %v929_v6  ;;  %v187_v57 = vrot.slane %v186_v55, 2  ;;  %v379_v61 = vadd.f32 %v378_v59, %v1807_v29 }
  0xc7   :  { %v571_v6 = vrot.slane %v1819_v43, 4 }
  0xc8   :  { %v953_v18 = vsel %vm1788_vm1, %v1834_v12, 0.0  ;;  %v188_v60 = vadd.f32 %v187_v57, %v186_v55  ;;  %v380_v63 = vrot.slane %v379_v61, 2 }
  0xc9   :  { %v1843_v25 = vsel %vm181_vm2, %v953_v18, 0.0  ;;  %v572_v29 = vadd.f32 %v571_v6, %v1819_v43  ;;  %v1658_v18 = vmov -1.0   ;;  %v385_v43 = vmul.f32 2.0, %v1801_v24 }
  0xca   :  { %v1073_v3 = vpop.f32.mrf.mxu0  ;;  %v189_v62 = vrot.slane %v188_v60, 1 }
  0xcb   :  { %1185 = vperm.xlu1 %1621, %v1596_v2   ;;  %v1074_v7 = vadd.f32 %v1073_v3, %v1050_v1  ;;  %v192_v2 = vmul.f32 2.0, %v1792_v13  ;;  %v29_v13 = vsel %vm28_vm3, 1.0, %v1658_v18 }
  0xcc   :  { %v1143_v8 = vpop.f32.mrf.mxu3  ;;  %v190_v0 = vadd.f32 %v189_v62, %v188_v60 }
  0xcd   :  { %v1097_v9 = vpop.f32.mrf.mxu1  ;;  %v1121_v11 = vpop.f32.mrf.mxu2 }
  0xce   :  { %v1098_v14 = vadd.f32 %v1097_v9, %v1074_v7  ;;  %v414_v7 = vpop.permute.xlu2 %413  ;;  %v381_v9 = vadd.f32 %v380_v63, %v379_v61 }
  0xcf   :  { %vm416_vm6 = vcmp.eq.s32.totalorder %v414_v7, %v1624_v54 }
  0xd0   :  { %v1122_v19 = vadd.f32 %v1121_v11, %v1098_v14  ;;  %v221_v11 = vpop.permute.xlu1 %220 }
  0xd2   :  { %v1216_v15 = vpop.f32.mrf.mxu0  ;;  %v1845_v26 = vadd.f32 %v1143_v8, %v1122_v19 }
  0xd4   :  { %v1290_v20 = vpop.f32.mrf.mxu3  ;;  %v1146_v31 = vsel %vm1788_vm1, %v1845_v26, 0.0 }
  0xd5   :  { %v1242_v21 = vpop.f32.mrf.mxu1  ;;  %v1266_v22 = vpop.f32.mrf.mxu2  ;;  %v1852_v36 = vsel %vm181_vm2, %v1146_v31, 0.0 }
  0xd6   :  { %v1243_v23 = vadd.f32 %v1242_v21, %v1216_v15  ;;  %799 = vperm.xlu2 %1622, %v1590_v17   ;;  %v382_v17 = vrot.slane %v381_v9, 1  ;;  %v1625_v21 = vld [vmem:[%s1966_s1 + $0x1] ss:$0 sm:$0xff] }
  0xd7   :  { %vm223_vm5 = vcmp.eq.s32.totalorder %v221_v11, %v1625_v21  ;;  %v1150_v21 = vrot.slane %v1852_v36, 4 }
  0xd8   :  { %v1267_v27 = vadd.f32 %v1266_v22, %v1243_v23  ;;  %955 = vadd.xlane.f32.xlu0 %v1843_v25  ;;  %v383_v22 = vadd.f32 %v382_v17, %v381_v9  ;;  %v224_v4 = vsel %vm223_vm5, 1.0, %v1658_v18 }
  0xda   :  { %v1291_v28 = vadd.f32 %v1290_v20, %v1267_v27  ;;  %v1314_v30 = vpop.f32.mrf.mxu0  ;;  %v573_v20 = vrot.slane %v572_v29, 2 }
  0xdc   :  { %v1315_v32 = vadd.f32 %v1314_v30, %v1291_v28  ;;  %v1435_v33 = vpop.f32.mrf.mxu3 }
  0xdd   :  { %v1336_v34 = vpop.f32.mrf.mxu1  ;;  %v1409_v35 = vpop.f32.mrf.mxu2 }
  0xde   :  { %v1436_v37 = vadd.f32 %v1435_v33, %v1409_v35  ;;  %v1854_v38 = vadd.f32 %v1336_v34, %v1315_v32  ;;  %v607_v32 = vpop.permute.xlu1 %606  ;;  %v574_v33 = vadd.f32 %v573_v20, %v572_v29  ;;  %v764_v34 = vrot.slane %v1828_v56, 4 }
  0xe0   :  { %1148 = vadd.xlane.f32.xlu0 %v1852_v36  ;;  %v1339_v42 = vsel %vm1788_vm1, %v1854_v38, 0.0  ;;  %v765_v5 = vadd.f32 %v764_v34, %v1828_v56 }
  0xe1   :  { %v1861_v47 = vsel %vm181_vm2, %v1339_v42, 0.0  ;;  %v575_v42 = vrot.slane %v574_v33, 1 }
  0xe2   :  { %v1459_v39 = vpop.f32.mrf.mxu0 }
  0xe3   :  { %v1460_v41 = vadd.f32 %v1459_v39, %v1436_v37 }
  0xe4   :  { %v1529_v48 = vpop.f32.mrf.mxu3 }
  0xe5   :  { %v1483_v44 = vpop.f32.mrf.mxu1  ;;  %v1507_v45 = vpop.f32.mrf.mxu2 }
  0xe6   :  { %v1484_v46 = vadd.f32 %v1483_v44, %v1460_v41 }
  0xe8   :  { %v1508_v49 = vadd.f32 %v1507_v45, %v1484_v46  ;;  %1341 = vadd.xlane.f32.xlu0 %v1861_v47  ;;  %v766_v45 = vrot.slane %v765_v5, 2  ;;  %v576_v46 = vadd.f32 %v575_v42, %v574_v33  ;;  %v1343_v33 = vrot.slane %v1861_v47, 4 }
  0xea   :  { %v1864_v50 = vadd.f32 %v1529_v48, %v1508_v49  ;;  %v767_v56 = vadd.f32 %v766_v45, %v765_v5  ;;  %v1344_v34 = vadd.f32 %v1343_v33, %v1861_v47 }
  0xec   :  { %v1532_v52 = vsel %vm1788_vm1, %v1864_v50, 0.0  ;;  %v768_v62 = vrot.slane %v767_v56, 1 }
  0xed   :  { %v1870_v53 = vsel %vm181_vm2, %v1532_v52, 0.0  ;;  %v578_v52 = vmul.f32 2.0, %v1813_v40  ;;  %v417_v40 = vsel %vm416_vm6, 1.0, %v1658_v18 }
  0xee   :  { %v1536_v42 = vrot.slane %v1870_v53, 4 }
  0xf0   :  { %1534 = vadd.xlane.f32.xlu0 %v1870_v53  ;;  %v1537_v47 = vadd.f32 %v1536_v42, %v1870_v53 }
 0x104   :  { %1378 = vperm.xlu0 %1620, %v1599_v58  }
 0x10d   :  { %v184_v1 = vpop.xlane.xlu0 %183 }
 0x10e   :  { %v191_v3 = vadd.f32 %v190_v0, %v184_v1  ;;  %v769_v0 = vadd.f32 %v768_v62, %v767_v56  ;;  %v1538_v56 = vrot.slane %v1537_v47, 2 }
 0x110   :  { %v193_v8 = vsub.f32 %v191_v3, %v192_v2  ;;  %v1626_v3 = vld [vmem:[%s1966_s1 + $0x3] ss:$0 sm:$0xff] }
 0x111   :  { %vm609_vm7 = vcmp.eq.s32.totalorder %v607_v32, %v1626_v3  ;;  %v1350_v3 = vmul.f32 2.0, %v1854_v38 }
 0x112   :  { %v194_v14 = vmax.f32 %v193_v8, 0.0  ;;  %v610_v51 = vsel %vm609_vm7, 1.0, %v1658_v18 }
 0x114   :  { %v195_v15 = vsub.f32 0.44, %v194_v14  ;;  %v957_v14 = vrot.slane %v1843_v25, 4 }
 0x116   :  { %v196_v19 = vmul.f32 %v195_v15, %v29_v13  ;;  %v958_v17 = vadd.f32 %v957_v14, %v1843_v25 }
 0x118   :  { %v197_v23 = vsub.f32 0.05, %v196_v19  ;;  %v959_v20 = vrot.slane %v958_v17, 2 }
 0x119   :  { %v377_v27 = vpop.xlane.xlu2 %376 }
 0x11a   :  { %v384_v30 = vadd.f32 %v383_v22, %v377_v27  ;;  %v198_v31 = vmax.f32 %v197_v23, 0.0 }
 0x11c   :  { %v386_v35 = vsub.f32 %v384_v30, %v385_v43  ;;  %v199_v37 = vsel %vm1892_vm4, %v198_v31, 0.0  ;;  %v1151_v43 = vadd.f32 %v1150_v21, %v1852_v36  ;;  %v960_v30 = vadd.f32 %v959_v20, %v958_v17 }
 0x11d   :  { %v200_v39 = vsel %vm181_vm2, %v199_v37, 0.0 }
 0x11e   :  { %v387_v41 = vmax.f32 %v386_v35, 0.0  ;;  %201 = vadd.xlane.f32.xlu1 %v200_v39  ;;  %v1152_v32 = vrot.slane %v1151_v43, 2  ;;  %v961_v25 = vrot.slane %v960_v30, 1 }
 0x120   :  { %v388_v24 = vsub.f32 0.44, %v387_v41  ;;  %v993_v31 = vpop.permute.xlu0 %992  ;;  %v962_v35 = vadd.f32 %v961_v25, %v960_v30  ;;  %v1153_v37 = vadd.f32 %v1152_v32, %v1151_v43  ;;  %v964_v41 = vmul.f32 2.0, %v1834_v12 }
 0x122   :  { %v389_v44 = vmul.f32 %v388_v24, %v224_v4  ;;  %v1628_v4 = vld [vmem:[%s1966_s1 + $0x4] ss:$0 sm:$0xff]  ;;  %v1345_v24 = vrot.slane %v1344_v34, 2  ;;  %v1154_v45 = vrot.slane %v1153_v37, 1 }
 0x124   :  { %v390_v48 = vsub.f32 0.05, %v389_v44 }
 0x125   :  { %v570_v49 = vpop.xlane.xlu1 %569 }
 0x126   :  { %v577_v55 = vadd.f32 %v576_v46, %v570_v49  ;;  %v391_v57 = vmax.f32 %v390_v48, 0.0  ;;  %v1155_v49 = vadd.f32 %v1154_v45, %v1153_v37 }
 0x128   :  { %v579_v58 = vsub.f32 %v577_v55, %v578_v52  ;;  %v392_v59 = vsel %vm1892_vm4, %v391_v57, 0.0  ;;  %v1346_v52 = vadd.f32 %v1345_v24, %v1344_v34  ;;  %v1157_v55 = vmul.f32 2.0, %v1845_v26  ;;  %v1627_v57 = vld [vmem:[%s1966_s1 + $0x5] ss:$0 sm:$0xff]  ;;  %v1630_v34 = vld [vmem:[%s1966_s1 + $0x7] ss:$0 sm:$0xff] }
 0x129   :  { %v393_v60 = vsel %vm181_vm2, %v392_v59, 0.0  ;;  %vm995_vm9 = vcmp.eq.s32.totalorder %v993_v31, %v1627_v57 }
 0x12a   :  { %v580_v10 = vmax.f32 %v579_v58, 0.0  ;;  %394 = vadd.xlane.f32.xlu2 %v393_v60  ;;  %v996_v26 = vsel %vm995_vm9, 1.0, %v1658_v18 }
 0x12c   :  { %v581_v61 = vsub.f32 0.44, %v580_v10  ;;  %v1347_v10 = vrot.slane %v1346_v52, 1 }
 0x12e   :  { %v582_v63 = vmul.f32 %v581_v61, %v417_v40 }
 0x130   :  { %v583_v1 = vsub.f32 0.05, %v582_v63  ;;  %v1348_v63 = vadd.f32 %v1347_v10, %v1346_v52 }
 0x131   :  { %v763_v2 = vpop.xlane.xlu2 %762 }
 0x132   :  { %v770_v6 = vadd.f32 %v769_v0, %v763_v2  ;;  %v584_v8 = vmax.f32 %v583_v1, 0.0  ;;  %v1539_v1 = vadd.f32 %v1538_v56, %v1537_v47 }
 0x134   :  { %v772_v9 = vsub.f32 %v770_v6, %v771_v16  ;;  %v585_v7 = vsel %vm1892_vm4, %v584_v8, 0.0  ;;  %v1629_v6 = vld [vmem:[%s1966_s1 + $0x6] ss:$0 sm:$0xff]  ;;  %v1540_v14 = vrot.slane %v1539_v1, 1 }
 0x135   :  { %v586_v11 = vsel %vm181_vm2, %v585_v7, 0.0 }
 0x136   :  { %v773_v29 = vmax.f32 %v772_v9, 0.0  ;;  %587 = vadd.xlane.f32.xlu2 %v586_v11 }
 0x138   :  { %v774_v15 = vsub.f32 0.44, %v773_v29 }
 0x139   :  { %v800_v36 = vpop.permute.xlu2 %799 }
 0x13a   :  { %v775_v13 = vmul.f32 %v774_v15, %v610_v51  ;;  %vm802_vm8 = vcmp.eq.s32.totalorder %v800_v36, %v1628_v4 }
 0x13b   :  { %v803_v12 = vsel %vm802_vm8, 1.0, %v1658_v18 }
 0x13c   :  { %v776_v19 = vsub.f32 0.05, %v775_v13  ;;  %v1541_v13 = vadd.f32 %v1540_v14, %v1539_v1 }
 0x13d   :  { %v1186_v7 = vpop.permute.xlu1 %1185 }
 0x13e   :  { %v777_v22 = vmax.f32 %v776_v19, 0.0  ;;  %vm1188_vm10 = vcmp.eq.s32.totalorder %v1186_v7, %v1629_v6 }
 0x13f   :  { %v1189_v38 = vsel %vm1188_vm10, 1.0, %v1658_v18 }
 0x140   :  { %v778_v23 = vsel %vm1892_vm4, %v777_v22, 0.0  ;;  %v1543_v22 = vmul.f32 2.0, %v1864_v50 }
 0x141   :  { %v779_v27 = vsel %vm181_vm2, %v778_v23, 0.0 }
 0x142   :  { %780 = vadd.xlane.f32.xlu1 %v779_v27 }
 0x14b   :  { %v956_v39 = vpop.xlane.xlu0 %955 }
 0x14c   :  { %v963_v5 = vadd.f32 %v962_v35, %v956_v39 }
 0x14e   :  { %v965_v44 = vsub.f32 %v963_v5, %v964_v41 }
 0x150   :  { %v966_v46 = vmax.f32 %v965_v44, 0.0 }
 0x152   :  { %v967_v48 = vsub.f32 0.44, %v966_v46 }
 0x153   :  { %v1149_v54 = vpop.xlane.xlu0 %1148 }
 0x154   :  { %v1156_v58 = vadd.f32 %v1155_v49, %v1149_v54  ;;  %v968_v59 = vmul.f32 %v967_v48, %v803_v12 }
 0x156   :  { %v1158_v60 = vsub.f32 %v1156_v58, %v1157_v55  ;;  %v969_v61 = vsub.f32 0.05, %v968_v59 }
 0x158   :  { %v1159_v53 = vmax.f32 %v1158_v60, 0.0  ;;  %v970_v62 = vmax.f32 %v969_v61, 0.0 }
 0x15a   :  { %v1160_v40 = vsub.f32 0.44, %v1159_v53  ;;  %v971_v0 = vsel %vm1892_vm4, %v970_v62, 0.0 }
 0x15b   :  { %v1342_v2 = vpop.xlane.xlu0 %1341  ;;  %v972_v16 = vsel %vm181_vm2, %v971_v0, 0.0 }
 0x15c   :  { %v1349_v8 = vadd.f32 %v1348_v63, %v1342_v2  ;;  %973 = vadd.xlane.f32.xlu0 %v972_v16  ;;  %v1161_v9 = vmul.f32 %v1160_v40, %v996_v26 }
 0x15e   :  { %v1351_v11 = vsub.f32 %v1349_v8, %v1350_v3  ;;  %v1162_v29 = vsub.f32 0.05, %v1161_v9 }
 0x160   :  { %v1352_v15 = vmax.f32 %v1351_v11, 0.0  ;;  %v1163_v51 = vmax.f32 %v1162_v29, 0.0 }
 0x162   :  { %v1353_v17 = vsub.f32 0.44, %v1352_v15  ;;  %v1164_v19 = vsel %vm1892_vm4, %v1163_v51, 0.0 }
 0x163   :  { %v1535_v20 = vpop.xlane.xlu0 %1534  ;;  %v1165_v21 = vsel %vm181_vm2, %v1164_v19, 0.0 }
 0x164   :  { %v1542_v23 = vadd.f32 %v1541_v13, %v1535_v20  ;;  %1166 = vadd.xlane.f32.xlu2 %v1165_v21  ;;  %v1354_v27 = vmul.f32 %v1353_v17, %v1189_v38 }
 0x166   :  { %v1544_v43 = vsub.f32 %v1542_v23, %v1543_v22  ;;  %v1355_v30 = vsub.f32 0.05, %v1354_v27 }
 0x168   :  { %v1356_v31 = vmax.f32 %v1355_v30, 0.0  ;;  %v1545_v25 = vmax.f32 %v1544_v43, 0.0 }
 0x16a   :  { %v1357_v32 = vsel %vm1892_vm4, %v1356_v31, 0.0  ;;  %v1546_v37 = vsub.f32 0.44, %v1545_v25 }
 0x16b   :  { %v1358_v33 = vsel %vm181_vm2, %v1357_v32, 0.0 }
 0x16c   :  { %1359 = vadd.xlane.f32.xlu1 %v1358_v33 }
 0x176   :  { %v1379_v35 = vpop.permute.xlu0 %1378 }
 0x177   :  { %vm1381_vm11 = vcmp.eq.s32.totalorder %v1379_v35, %v1630_v34 }
 0x178   :  { %v1382_v50 = vsel %vm1381_vm11, 1.0, %v1658_v18 }
 0x179   :  { %v1547_v39 = vmul.f32 %v1546_v37, %v1382_v50 }
 0x17b   :  { %v1548_v41 = vsub.f32 0.05, %v1547_v39 }
 0x17d   :  { %v1549_v4 = vmax.f32 %v1548_v41, 0.0 }
 0x17f   :  { %v1550_v5 = vsel %vm1892_vm4, %v1549_v4, 0.0 }
 0x180   :  { %v1551_v36 = vsel %vm181_vm2, %v1550_v5, 0.0 }
 0x181   :  { %1552 = vadd.xlane.f32.xlu0 %v1551_v36 }
 0x191   :  { %v202_v24 = vpop.xlane.xlu1 %201 }
 0x192   :  { %v203_v42 = vrot.slane %v202_v24, 4 }
 0x194   :  { %v204_v44 = vadd.f32 %v203_v42, %v202_v24 }
 0x196   :  { %v205_v45 = vrot.slane %v204_v44, 2 }
 0x198   :  { %v206_v46 = vadd.f32 %v205_v45, %v204_v44 }
 0x19a   :  { %v207_v47 = vrot.slane %v206_v46, 1 }
 0x19c   :  { %v208_v48 = vadd.f32 %v207_v47, %v206_v46 }
 0x19d   :  { %v395_v49 = vpop.xlane.xlu2 %394 }
 0x19e   :  { %v396_v52 = vrot.slane %v395_v49, 4  ;;  %1601 = vpush %v208_v48 }
 0x1a0   :  { %v397_v18 = vadd.f32 %v396_v52, %v395_v49 }
 0x1a2   :  { %v398_v12 = vrot.slane %v397_v18, 2 }
 0x1a4   :  { %v399_v54 = vadd.f32 %v398_v12, %v397_v18 }
 0x1a6   :  { %v400_v55 = vrot.slane %v399_v54, 1 }
 0x1a8   :  { %v401_v57 = vadd.f32 %v400_v55, %v399_v54 }
 0x1a9   :  { %v588_v28 = vpop.xlane.xlu2 %587 }
 0x1aa   :  { %v589_v58 = vrot.slane %v588_v28, 4  ;;  %1603 = vpush %v401_v57 }
 0x1ac   :  { %v590_v59 = vadd.f32 %v589_v58, %v588_v28 }
 0x1ae   :  { %v591_v56 = vrot.slane %v590_v59, 2 }
 0x1b0   :  { %v592_v60 = vadd.f32 %v591_v56, %v590_v59 }
 0x1b2   :  { %v593_v10 = vrot.slane %v592_v60, 1 }
 0x1b4   :  { %v594_v61 = vadd.f32 %v593_v10, %v592_v60 }
 0x1b5   :  { %v781_v53 = vpop.xlane.xlu1 %780 }
 0x1b6   :  { %v782_v62 = vrot.slane %v781_v53, 4  ;;  %1605 = vpush %v594_v61 }
 0x1b8   :  { %v783_v40 = vadd.f32 %v782_v62, %v781_v53 }
 0x1ba   :  { %v784_v63 = vrot.slane %v783_v40, 2 }
 0x1bc   :  { %v785_v0 = vadd.f32 %v784_v63, %v783_v40 }
 0x1be   :  { %v786_v1 = vrot.slane %v785_v0, 1 }
 0x1c0   :  { %v787_v26 = vadd.f32 %v786_v1, %v785_v0 }
 0x1c2   :  { %1607 = vpush %v787_v26 }
 0x1cf   :  { %v974_v2 = vpop.xlane.xlu0 %973  ;;  %s1602_s1 = spop %1601 }
 0x1d0   :  { %v975_v16 = vrot.slane %v974_v2, 4  ;;  %s210_s30 = smul.f32 0.015625, %s1602_s1 }
 0x1d2   :  { %v976_v3 = vadd.f32 %v975_v16, %v974_v2  ;;  %v211_v6 = vstv %s210_s30 }
 0x1d3   :  { %212 = vst [vmem:[#allocation2] sm:$0x1] %v211_v6 }
 0x1d4   :  { %v977_v8 = vrot.slane %v976_v3, 2 }
 0x1d6   :  { %v978_v9 = vadd.f32 %v977_v8, %v976_v3 }
 0x1d7   :  { %v1167_v7 = vpop.xlane.xlu2 %1166 }
 0x1d8   :  { %v1168_v11 = vrot.slane %v1167_v7, 4  ;;  %v979_v14 = vrot.slane %v978_v9, 1 }
 0x1da   :  { %v1169_v29 = vadd.f32 %v1168_v11, %v1167_v7  ;;  %v980_v15 = vadd.f32 %v979_v14, %v978_v9 }
 0x1db   :  { %s1604_s4 = spop %1603 }
 0x1dc   :  { %v1170_v51 = vrot.slane %v1169_v29, 2  ;;  %s403_s5 = smul.f32 0.015625, %s1604_s4  ;;  %1609 = vpush %v980_v15 }
 0x1de   :  { %v1171_v17 = vadd.f32 %v1170_v51, %v1169_v29  ;;  %v404_v13 = vstv %s403_s5 }
 0x1df   :  { %405 = vst [vmem:[#allocation2 + $0x1] sm:$0x1] %v404_v13  ;;  %v1360_v19 = vpop.xlane.xlu1 %1359 }
 0x1e0   :  { %v1361_v38 = vrot.slane %v1360_v19, 4  ;;  %v1172_v20 = vrot.slane %v1171_v17, 1 }
 0x1e2   :  { %v1362_v21 = vadd.f32 %v1361_v38, %v1360_v19  ;;  %v1173_v22 = vadd.f32 %v1172_v20, %v1171_v17 }
 0x1e4   :  { %v1363_v23 = vrot.slane %v1362_v21, 2  ;;  %1611 = vpush %v1173_v22 }
 0x1e6   :  { %v1364_v27 = vadd.f32 %v1363_v23, %v1362_v21 }
 0x1e7   :  { %s1606_s6 = spop %1605 }
 0x1e8   :  { %s596_s7 = smul.f32 0.015625, %s1606_s6  ;;  %v1365_v43 = vrot.slane %v1364_v27, 1 }
 0x1ea   :  { %v597_v30 = vstv %s596_s7  ;;  %v1366_v31 = vadd.f32 %v1365_v43, %v1364_v27 }
 0x1eb   :  { %598 = vst [vmem:[#allocation2 + $0x2] sm:$0x1] %v597_v30 }
 0x1ec   :  { %1613 = vpush %v1366_v31 }
 0x1f3   :  { %s1608_s8 = spop %1607 }
 0x1f4   :  { %s789_s9 = smul.f32 0.015625, %s1608_s8  ;;  %v1553_v32 = vpop.xlane.xlu0 %1552 }
 0x1f5   :  { %v1554_v33 = vrot.slane %v1553_v32, 4 }
 0x1f6   :  { %v790_v25 = vstv %s789_s9 }
 0x1f7   :  { %791 = vst [vmem:[#allocation2 + $0x3] sm:$0x1] %v790_v25  ;;  %v1555_v34 = vadd.f32 %v1554_v33, %v1553_v32 }
 0x1f9   :  { %v1556_v35 = vrot.slane %v1555_v34, 2 }
 0x1fb   :  { %v1557_v37 = vadd.f32 %v1556_v35, %v1555_v34 }
 0x1fd   :  { %v1558_v50 = vrot.slane %v1557_v37, 1 }
 0x1ff   :  { %v1559_v39 = vadd.f32 %v1558_v50, %v1557_v37 }
 0x201   :  { %1615 = vpush %v1559_v39 }
 0x20d   :  { %s1610_s10 = spop %1609 }
 0x20e   :  { %s982_s11 = smul.f32 0.015625, %s1610_s10 }
 0x210   :  { %v983_v41 = vstv %s982_s11 }
 0x211   :  { %984 = vst [vmem:[#allocation2 + $0x4] sm:$0x1] %v983_v41 }
 0x215   :  { %s1612_s12 = spop %1611 }
 0x216   :  { %s1175_s13 = smul.f32 0.015625, %s1612_s12 }
 0x218   :  { %v1176_v4 = vstv %s1175_s13 }
 0x219   :  { %1177 = vst [vmem:[#allocation2 + $0x5] sm:$0x1] %v1176_v4 }
 0x21d   :  { %s1614_s14 = spop %1613 }
 0x21e   :  { %s1368_s15 = smul.f32 0.015625, %s1614_s14 }
 0x220   :  { %v1369_v5 = vstv %s1368_s15 }
 0x221   :  { %1370 = vst [vmem:[#allocation2 + $0x6] sm:$0x1] %v1369_v5 }
 0x232   :  { %s1616_s20 = spop %1615 }
 0x233   :  { %s1561_s21 = smul.f32 0.015625, %s1616_s20 }
 0x235   :  { %v1562_v36 = vstv %s1561_s21 }
 0x236   :  { %1563 = vst [vmem:[#allocation2 + $0x7] sm:$0x1] %v1562_v36 }
 0x237   :  { %1574 = dma.vmem_to_hbm [thread:$0]  %s1570_s17, 128, %s1572_s19, [#allocation3]  }
 0x238   :  { %1655 = dma.done.wait [#allocation3], 128  }
 0x239   :  { %1656 = vsyncadd [#allocation3], 4294967168 }
 0x23a   :  { %1579 = vsyncpa [#allocation3], 1 }

</bundles_post_ra>
